<compile_context>
chip_gen: v7x
topology: tpu7x:2x2x1
jax: 0.10.0
libtpu: 0.0.40
codegen_flags: <defaults>
</compile_context>

<pallas_src>
import math
import numpy as np
import jax
import jax.numpy as jnp
from jax.experimental import pallas as pl
from jax.experimental.pallas import tpu as pltpu

D_MODEL = 512            # embedding dim (module hard-codes 512)
D_CAT = 2 * D_MODEL      # torch.cat([embedding, positional_encoding], dim=2) -> 1024
GEN_VOCAB = 2048         # Generator(1024, 2048)
TS_MAX = 256             # seq-row tile cap (v7x 64 MiB VMEM / v5e 128x128 MXU friendly)


def _round_up(x, m):
    return (x + m - 1) // m * m


def _choose_seq_tile(s):
    """Pick a row tile (multiple of 16 for bf16 sublane packing) with <=10% padding waste."""
    s16 = _round_up(max(int(s), 1), 16)
    for ts in (TS_MAX, 128, 64, 32):
        if ts <= s16:
            padded = _round_up(s16, ts)
            if (padded - s) / padded <= 0.10:
                return ts, padded
    return 16, s16


# ---------------------------------------------------------------------------
# Pallas kernel: y[b, s_tile] = emb[b, s_tile] @ W_emb + (pe @ W_pe + bias)[s_tile]
#   * W_emb (512, 2048) bf16 stays resident in VMEM (constant block index).
#   * pe_bias tile is batch-invariant (constant across the inner batch axis).
# ---------------------------------------------------------------------------
def _generator_kernel(emb_ref, w_ref, peb_ref, out_ref):
    # emb_ref : (ts, 512)   bf16  embedding rows (sqrt(d_model) pre-folded)
    # w_ref   : (512, 2048) bf16  embedding-half of the generator weight (resident)
    # peb_ref : (ts, 2048)  f32   pe[:S] @ W_pe + bias  (batch-invariant)
    # out_ref : (ts, 2048)  f32   logits
    out_ref[...] = (
        jnp.dot(emb_ref[...], w_ref[...], preferred_element_type=jnp.float32)
        + peb_ref[...]
    )


def _run_generator(emb_bf16, w_emb_t_bf16, pe_bias_f32, ts):
    """emb (B, S_pad, 512) bf16; w_emb_t (512, 2048) bf16; pe_bias (S_pad, 2048) f32."""
    B, s_pad, d = emb_bf16.shape
    grid = (s_pad // ts, B)   # seq tiles outer, batch inner -> W and pe_bias stay resident
    return pl.pallas_call(
        _generator_kernel,
        out_shape=jax.ShapeDtypeStruct((B, s_pad, GEN_VOCAB), jnp.float32),
        grid=grid,
        in_specs=[
            pl.BlockSpec((None, ts, d), lambda s, b: (b, s, 0)),        # activations
            pl.BlockSpec((d, GEN_VOCAB), lambda s, b: (0, 0)),          # weight: resident
            pl.BlockSpec((ts, GEN_VOCAB), lambda s, b: (s, 0)),         # pe_bias: batch-invariant
        ],
        out_specs=pl.BlockSpec((None, ts, GEN_VOCAB), lambda s, b: (b, s, 0)),
        compiler_params=pltpu.CompilerParams(
            dimension_semantics=("parallel", "parallel"),
            vmem_limit_bytes=32 * 1024 * 1024,
        ),
    )(emb_bf16, w_emb_t_bf16, pe_bias_f32)


# ---------------------------------------------------------------------------
# Parameter construction (deterministic, in-script)
# ---------------------------------------------------------------------------
def make_params(vocab, key):
    k_lut, k_w, k_b = jax.random.split(key, 3)
    lut = jax.random.normal(k_lut, (vocab, D_MODEL), dtype=jnp.float32)          # nn.Embedding
    w = jax.random.normal(k_w, (GEN_VOCAB, D_CAT), dtype=jnp.float32) * 0.02     # nn.Linear weight
    b = jax.random.normal(k_b, (GEN_VOCAB,), dtype=jnp.float32) * 0.02           # nn.Linear bias
    w_t = w.T                                                                    # (1024, 2048)
    return {
        # sqrt(d_model) folded into the LUT; stored bf16 so the gather is MXU-ready.
        "lut_scaled": (lut * math.sqrt(D_MODEL)).astype(jnp.bfloat16),           # (V, 512)
        "w_emb_t": w_t[:D_MODEL].astype(jnp.bfloat16),                           # (512, 2048)
        "w_pe_t": w_t[D_MODEL:].astype(jnp.bfloat16),                            # (512, 2048)
        "bias": b,                                                               # (2048,)
    }


def make_pe_table(max_len=7000, d_model=D_MODEL):
    position = np.arange(0, max_len, dtype=np.float32)[:, None]
    div_term = np.exp(np.arange(0, d_model, 2, dtype=np.float32) * (-math.log(10000.0) / d_model))
    pe = np.zeros((max_len, d_model), dtype=np.float32)
    pe[:, 0::2] = np.sin(position * div_term)
    pe[:, 1::2] = np.cos(position * div_term)
    return jnp.asarray(pe)


# ---------------------------------------------------------------------------
# Forward pass mirroring Transformer.forward
# ---------------------------------------------------------------------------
def transformer_forward(image, text_length, text_input, params, pe_table,
                        conv_feature=None, test=False):
    if conv_feature is None:
        # TODO(synk): ResNet encoder not provided; conv_feature must be supplied.
        raise NotImplementedError("ResNet encoder not provided; pass conv_feature explicitly.")
    if text_length is None:
        return {"conv": conv_feature}

    B, S = text_input.shape
    ts, s_pad = _choose_seq_tile(S)

    # Embeddings.forward: lut(x) * sqrt(d_model)   (scale folded into the LUT; gather in wrapper)
    ids = text_input.astype(jnp.int32)
    emb = jnp.take(params["lut_scaled"], ids, axis=0)                 # (B, S, 512) bf16
    if s_pad != S:
        emb = jnp.pad(emb, ((0, 0), (0, s_pad - S), (0, 0)))          # pad seq to tile multiple

    # PositionalEncoding on zeros => pe rows (dropout in eval = identity).
    # Batch-invariant half of the generator matmul precomputed once:
    #   pe_bias = pe[:S_pad] @ W_pe + b    (also folds in the Linear bias)
    pe_bias = (
        jnp.dot(pe_table[:s_pad].astype(jnp.bfloat16), params["w_pe_t"],
                preferred_element_type=jnp.float32)
        + params["bias"][None, :]
    )                                                                 # (S_pad, 2048) f32

    # TODO(synk): FIM / ImageAttention / TextAttention / Text_Decoder not provided;
    #             text stream goes straight to the generator (decoder treated as identity).
    word_pad = _run_generator(emb, params["w_emb_t"], pe_bias, ts)    # (B, S_pad, 2048) f32
    word_decoder_result = word_pad[:, :S, :]                          # drop seq padding

    attention_map = None   # from Text_Decoder (not provided)
    inpaint_x2 = None      # from ImageAttention (not provided)

    if test:
        return {"pred": word_decoder_result, "map": attention_map, "conv": conv_feature,
                "inpaint_map": inpaint_x2, "encoder_out1": None, "encoder_out2": None,
                "encoder_out3": None, "encoder_out4": None}
    else:
        # Pack the first `length` rows of each batch element contiguously.
        # One device-side gather instead of a per-batch host loop of slices.
        lengths = np.asarray(text_length).astype(np.int64)
        if lengths.size and int(lengths.sum()) > 0:
            src = np.concatenate([i * s_pad + np.arange(int(l)) for i, l in enumerate(lengths)])
        else:
            src = np.zeros((0,), dtype=np.int64)
        flat = word_pad.reshape(B * s_pad, GEN_VOCAB)
        probs_res = jnp.take(flat, jnp.asarray(src, dtype=jnp.int32), axis=0)  # (sum(len), 2048)
        return {"pred": probs_res, "map": attention_map, "conv": conv_feature,
                "inpaint_map": inpaint_x2, "encoder_out1": None, "encoder_out2": None,
                "encoder_out3": None, "encoder_out4": None}


# ---------------------------------------------------------------------------
if __name__ == "__main__":
    key = jax.random.PRNGKey(0)
    k_params, k_ids, k_conv = jax.random.split(key, 3)

    B, S = 2, 8
    VOCAB = 128                      # synthetic len(alphabet)

    params = make_params(VOCAB, k_params)
    pe_table = make_pe_table()

    text_input = jax.random.randint(k_ids, (B, S), 0, VOCAB, dtype=jnp.int32)
    text_length = np.array([5, 7], dtype=np.int32)
    # conv_feature is a pass-through (encoder not provided); keep NCHW like PyTorch.
    conv_feature = jax.random.normal(k_conv, (B, 1024, 8, 8), dtype=jnp.float32)
    image = jnp.zeros((B, 3, 32, 128), dtype=jnp.float32)   # unused when conv_feature is given

    out = transformer_forward(image, text_length, text_input, params, pe_table,
                              conv_feature=conv_feature, test=False)
    jax.block_until_ready(out["pred"])
    assert out["pred"].shape == (int(text_length.sum()), GEN_VOCAB)
    print("KERNEL_OK")
</pallas_src>

<mosaic_0001>
module attributes {stable_mosaic.version = 11 : i64} {
  func.func @_generator_kernel(%arg0: i32, %arg1: i32, %arg2: memref<1x16x512xbf16, #tpu.memory_space<vmem>>, %arg3: memref<512x2048xbf16, #tpu.memory_space<vmem>>, %arg4: memref<16x2048xf32, #tpu.memory_space<vmem>>, %arg5: memref<1x16x2048xf32, #tpu.memory_space<vmem>>) attributes {dimension_semantics = [#tpu.dimension_semantics<parallel>, #tpu.dimension_semantics<parallel>], iteration_bounds = array<i64: 1, 2>, scalar_prefetch = 0 : i64, scratch_operands = 0 : i64, tpu.core_type = #tpu.core_type<tc>, window_params = [{transform_indices = @transform_0, window_bounds = array<i64: 1, 16, 512>}, {pipeline_mode = #tpu.pipeline_mode<synchronous>, transform_indices = @transform_1, window_bounds = array<i64: 512, 2048>}, {transform_indices = @transform_2, window_bounds = array<i64: 16, 2048>}, {transform_indices = @transform_3, window_bounds = array<i64: 1, 16, 2048>}]} {
    %c0 = arith.constant 0 : index
    %c0_0 = arith.constant 0 : index
    %c0_1 = arith.constant 0 : index
    %0 = vector.load %arg2[%c0, %c0_0, %c0_1] : memref<1x16x512xbf16, #tpu.memory_space<vmem>>, vector<1x16x512xbf16>
    %1 = vector.shape_cast %0 : vector<1x16x512xbf16> to vector<16x512xbf16>
    %c0_2 = arith.constant 0 : index
    %c0_3 = arith.constant 0 : index
    %2 = vector.load %arg3[%c0_2, %c0_3] : memref<512x2048xbf16, #tpu.memory_space<vmem>>, vector<512x2048xbf16>
    %cst = arith.constant dense<0.000000e+00> : vector<16x2048xf32>
    %3 = tpu.matmul %1, %2, %cst {dimension_numbers = #tpu.dot_dimension_numbers<[1], [0], [0], [1], [0, 0, 1, 1], [], []>} : vector<16x512xbf16>, vector<512x2048xbf16>, vector<16x2048xf32> -> vector<16x2048xf32>
    %c0_4 = arith.constant 0 : index
    %c0_5 = arith.constant 0 : index
    %4 = vector.load %arg4[%c0_4, %c0_5] : memref<16x2048xf32, #tpu.memory_space<vmem>>, vector<16x2048xf32>
    %5 = arith.addf %3, %4 : vector<16x2048xf32>
    %c0_6 = arith.constant 0 : index
    %c0_7 = arith.constant 0 : index
    %c0_8 = arith.constant 0 : index
    %6 = vector.load %arg5[%c0_6, %c0_7, %c0_8] : memref<1x16x2048xf32, #tpu.memory_space<vmem>>, vector<1x16x2048xf32>
    %7 = vector.shape_cast %6 : vector<1x16x2048xf32> to vector<16x2048xf32>
    %8 = vector.shape_cast %5 : vector<16x2048xf32> to vector<1x16x2048xf32>
    tpu.vector_store %arg5[%c0_6, %c0_7, %c0_8], %8 {strides = array<i32>} : memref<1x16x2048xf32, #tpu.memory_space<vmem>>, vector<1x16x2048xf32>,
    return
  }
  func.func @transform_0(%arg0: i32, %arg1: i32) -> (i32, i32, i32) {
    %c0_i32 = arith.constant 0 : i32
    %c0_i32_0 = arith.constant 0 : i32
    return %arg1, %arg0, %c0_i32 : i32, i32, i32
  }
  func.func @transform_1(%arg0: i32, %arg1: i32) -> (i32, i32) {
    %c0_i32 = arith.constant 0 : i32
    %c0_i32_0 = arith.constant 0 : i32
    %c0_i32_1 = arith.constant 0 : i32
    return %c0_i32, %c0_i32_0 : i32, i32
  }
  func.func @transform_2(%arg0: i32, %arg1: i32) -> (i32, i32) {
    %c0_i32 = arith.constant 0 : i32
    %c0_i32_0 = arith.constant 0 : i32
    return %arg0, %c0_i32 : i32, i32
  }
  func.func @transform_3(%arg0: i32, %arg1: i32) -> (i32, i32, i32) {
    %c0_i32 = arith.constant 0 : i32
    %c0_i32_0 = arith.constant 0 : i32
    return %arg1, %arg0, %c0_i32 : i32, i32, i32
  }
}

</mosaic_0001>

<bundles_post_ra>
// kernel: tpu_custom_call.1
= control target key start
LH: loop header
LB: loop body
LE: loop exit
PB: predicated region body
PF: predicated region fallthrough
CT: control target
= control target key end

     0   :  { %8 = vsyncpa [#allocation3], 0  ;;  %s5481_s0 = inlined_call_operand.hbm [shape: bf16[2,16,512], index: 0, kind: input, shape index: {}]   ;;  %s5482_s1 = inlined_call_operand.hbm [shape: bf16[512,2048], index: 1, kind: input, shape index: {}]   ;;  %s5483_s2 = inlined_call_operand.hbm [shape: f32[16,2048], index: 2, kind: input, shape index: {}]   ;;  %s5484_s3 = inlined_call_operand.hbm [shape: f32[2,16,2048], index: 3, kind: output, shape index: {}]  }
   0x1   :  { %10 = vsyncpa [#allocation3 + $0x1], 0 }
   0x2   :  { %11 = vsyncpa [#allocation6], 0 }
   0x3   :  { %12 = vsyncpa [#allocation4], 0 }
   0x4   :  { %14 = vsyncpa [#allocation4 + $0x1], 0  ;;  %s5130_s12 = smov 0   ;;  %s5132_s13 = smov 0  }
   0x5   :  { %s5134_s14 = smov 0   ;;  %s5136_s15 = smov 0  }
   0x6   :  { %s5138_s16 = smov 0   ;;  %s5140_s17 = smov 0  }
   0x7 LB: > { %s4222_s18 = sadd.s32 4294967295, %s5096_s17   ;;  %s4223_s19 = sadd.s32 4294967294, %s5096_s17   ;;  %s5096_s17 = sphi %s5140_s17, %s20_s17   ;;  %s5092_s16 = sphi %s5138_s16, %s5506_s16   ;;  %s5088_s15 = sphi %s5136_s15, %s5505_s15   ;;  %s5084_s14 = sphi %s5134_s14, %s5504_s14   ;;  %s5080_s13 = sphi %s5132_s13, %s5503_s13   ;;  %s5076_s12 = sphi %s5130_s12, %s5502_s12  }
   0x8   : > { %p54_p0 = scmp.ne.s32.totalorder %s5080_s13, %s5076_s12  ;;  %p5164_p1 = scmp.eq.s32.totalorder %s4222_s18, 0 }
   0x9   : > { %p5168_p2 = scmp.eq.s32.totalorder %s4222_s18, 1  ;;  %p133_p3 = scmp.eq.s32.totalorder %s4223_s19, 1 }
   0xa   : > { %s5489_s20 = scalar_select %p5164_p1, 1, 0 }
   0xb   : > { %p5174_p4 = por %p5164_p1, %p54_p0  ;;  %p4224_p5 = scmp.ge.s32.totalorder %s5096_s17, 1 }
   0xc   : > { %p5179_p6 = por %p133_p3, %p54_p0  ;;  %p140_p7 = scmp.lt.s32.totalorder %s5096_s17, 3 }
   0xd   : > { %s5491_s22 = scalar_select %p5174_p4, 1, 0 }
   0xe   : > { %s5492_s23 = scalar_select %p5179_p6, 1, 0 }
   0xf   : > { %p5184_p8 = pnand %p4224_p5, %p140_p7  ;;  %s5098_s25 = smov [#allocation5]  }
  0x10   : > { %s152_s26 = sshll.u32 %s5098_s25, 4  ;;  %s5099_s28 = smov [#allocation7]   ;;  %s5188_s26 = int_to_ptr.vmem [resolvable:$true] %s152_s26 }
  0x11   : > { %p4835_p9 = pneg %p5184_p8  ;;  %s169_s29 = sshll.u32 %s5099_s28, 4  ;;  %s5199_s29 = int_to_ptr.vmem [resolvable:$true] %s169_s29 }
  0x12   : > { %s4924_s5 = scalar_lea.hbm %s5482_s1, 65536 }
  0x13   : > { %p5195_p11 = pnand %p4835_p9, %p5164_p1  ;;  %p4925_p12 = scmp.ne.s32.totalorder %s5482_s1, %s4924_s5 }
  0x14   : > { %p4931_p5 = scmp.lt.u32.totalorder %s4924_s5, %s5482_s1 }
  0x15   : > { %p4926_p13 = pneg %p5195_p11 }
  0x17   : > { %p4927_p0 = pnand %p4926_p13, %p4925_p12 }
  0x19   : > { %p4928_p3 = pneg %p4927_p0 }
  0x1b   : > { %p4933_p7 = pnand %p4931_p5, %p4928_p3 }
  0x1d   : > { %4936 = shalt.err (!%p4933_p7)
}
  0x1e   : > { %s4937_s10 = scalar_lea.vmem %s5188_s26, 65536  ;;  %p4945_p1 = scmp.lt.s32.totalorder %s5188_s26, %s5188_s26 }
  0x1f   : > { %p4938_p9 = scmp.ne.s32.totalorder %s5188_s26, %s4937_s10  ;;  %p4946_p12 = scmp.lt.s32.totalorder %s4937_s10, %s4937_s10 }
  0x21   : > { %p4940_p10 = pnand %p4938_p9, %p4926_p13  ;;  %p4947_p0 = por %p4946_p12, %p4945_p1 }
  0x23   : > { %p4941_p6 = pneg %p4940_p10 }
  0x25   : > { %p4948_p4 = pnand %p4947_p0, %p4941_p6 }
  0x27   : > { %4951 = shalt.err (!%p4948_p4)
}
  0x28   : > { %s5100_s11 = smov 1024   ;;  %s5101_s18 = smov 64  }
  0x29   : > { %4838 = dma.hbm_to_vmem [thread:$0]  (!%p5195_p11), %s5482_s1, 65536, %s5188_s26, [#allocation6], %s5100_s11, %s5100_s11, %s5101_s18  }
  0x2a   : > { %s4952_s4 = scalar_lea.hbm %s5483_s2, 4096 }
  0x2b   : > { %p4953_p1 = scmp.ne.s32.totalorder %s5483_s2, %s4952_s4  ;;  %p4959_p10 = scmp.lt.u32.totalorder %s4952_s4, %s5483_s2 }
  0x2d   : > { %p4955_p4 = pnand %p4953_p1, %p4926_p13 }
  0x2f   : > { %p4956_p6 = pneg %p4955_p4 }
  0x31   : > { %p4961_p3 = pnand %p4959_p10, %p4956_p6 }
  0x33   : > { %4964 = shalt.err (!%p4961_p3)
}
  0x34   : > { %s4965_s26 = scalar_lea.vmem %s5199_s29, 4096  ;;  %p4973_p12 = scmp.lt.s32.totalorder %s5199_s29, %s5199_s29 }
  0x35   : > { %p4966_p5 = scmp.ne.s32.totalorder %s5199_s29, %s4965_s26  ;;  %p4974_p0 = scmp.lt.s32.totalorder %s4965_s26, %s4965_s26 }
  0x37   : > { %p4968_p7 = pnand %p4966_p5, %p4926_p13  ;;  %p4975_p1 = por %p4974_p0, %p4973_p12 }
  0x39   : > { %p4969_p9 = pneg %p4968_p7 }
  0x3b   : > { %p4976_p4 = pnand %p4975_p1, %p4969_p9 }
  0x3d   : > { %4979 = shalt.err (!%p4976_p4)
}
  0x3e   : > { %s5102_s9 = smov 2048   ;;  %s5103_s10 = smov 128  }
  0x3f   : > { %4841 = dma.hbm_to_vmem [thread:$0]  (!%p5195_p11), %s5483_s2, 4096, %s5199_s29, [#allocation6], %s5102_s9, %s5102_s9, %s5103_s10  }
  0x40   : > { %s29_s19 = sadd.s32 1, %s5092_s16  ;;  %s41_s25 = sadd.s32 1, %s5084_s14 }
  0x41   : > { %p30_p13 = scmp.ge.s32.totalorder %s29_s19, 2  ;;  %p48_p6 = scmp.ne.s32.totalorder %s5084_s14, %s5080_s13 }
  0x42   : > { %p49_p10 = scmp.eq.s32.totalorder %s5096_s17, 0  ;;  %p4852_p3 = scmp.lt.s32.totalorder %s5096_s17, 2 }
  0x43   : > { %s5508_s19 = smov (%p30_p13, %s29_s19), 0  ;;  %p5263_p7 = por %p5168_p2, %p48_p6 }
  0x44   : > { %p50_p5 = por %p49_p10, %p48_p6  ;;  %s36_s27 = ssub.s32 %s5092_s16, %s5508_s19 }
  0x45   : > { %s5495_s28 = scalar_select %p5263_p7, 1, 0 }
  0x46   : > { %s183_s30 = sand.u32 1, %s5084_s14   ;;  %p39_p9 = scmp.eq.s32.totalorder %s36_s27, 0 }
  0x47   : > { %s4228_s29 = sshll.u32 %s183_s30, 5  ;;  %s4757_s4 = sshll.u32 %s5092_s16, 9 }
  0x48   : > { %s5272_s5 = scalar_select %p39_p9, %s5084_s14, %s41_s25  }
  0x49   : > { %s5277_s8 = scalar_lea.hbm %s5481_s0, %s4757_s4  ;;  %s187_s21 = scalar_lea.vmem [#allocation2], %s4228_s29 }
  0x4a   : > { %s197_s26 = sshll.u32 %s187_s21, 4  ;;  %p5281_p2 = pnand %p4852_p3, %p50_p5  ;;  %s5285_s26 = int_to_ptr.vmem [resolvable:$true] %s197_s26 }
  0x4b   : > { %s5287_s10 = scalar_lea.sflag [#allocation3], %s183_s30  ;;  %s4980_s11 = scalar_lea.hbm %s5277_s8, 512 }
  0x4c   : > { %p4981_p11 = scmp.ne.s32.totalorder %s5277_s8, %s4980_s11  ;;  %p4982_p12 = pneg %p5281_p2 }
  0x4d   : > { %s4985_s27 = scalar_lea.hbm %s5481_s0, 1024  ;;  %p4986_p4 = scmp.lt.u32.totalorder %s5277_s8, %s5481_s0 }
  0x4e   : > { %p4983_p0 = pnand %p4982_p12, %p4981_p11  ;;  %p4987_p13 = scmp.lt.u32.totalorder %s4985_s27, %s4980_s11 }
  0x4f   : > { %p4989_p10 = scmp.lt.u32.totalorder %s4980_s11, %s5277_s8 }
  0x50   : > { %p4984_p1 = pneg %p4983_p0  ;;  %p4988_p6 = por %p4987_p13, %p4986_p4 }
  0x52   : > { %p4990_p3 = por %p4989_p10, %p4988_p6 }
  0x54   : > { %p4991_p5 = pnand %p4990_p3, %p4984_p1 }
  0x56   : > { %4994 = shalt.err (!%p4991_p5)
}
  0x57   : > { %s4995_s30 = scalar_lea.vmem %s5285_s26, 512  ;;  %s5104_s6 = smov [#allocation2]  }
  0x58   : > { %p4996_p9 = scmp.ne.s32.totalorder %s5285_s26, %s4995_s30  ;;  %s5000_s7 = sshll.u32 %s5104_s6, 4  ;;  %s5001_s7 = int_to_ptr.vmem [resolvable:$false] %s5000_s7 }
  0x59   : > { %s5002_s21 = scalar_lea.vmem %s5001_s7, 1024  ;;  %p5003_p7 = scmp.lt.s32.totalorder %s5285_s26, %s5001_s7 }
  0x5a   : > { %p4998_p11 = pnand %p4996_p9, %p4982_p12  ;;  %p5004_p4 = scmp.lt.s32.totalorder %s5002_s21, %s4995_s30 }
  0x5c   : > { %p4999_p0 = pneg %p4998_p11  ;;  %p5005_p13 = por %p5004_p4, %p5003_p7 }
  0x5e   : > { %p5006_p6 = pnand %p5005_p13, %p4999_p0 }
  0x60   : > { %5009 = shalt.err (!%p5006_p6)
}
  0x61   : > { %s5105_s11 = smov 256   ;;  %s5106_s18 = smov 16  }
  0x62   : > { %4845 = dma.hbm_to_vmem [thread:$0]  (!%p5281_p2), %s5277_s8, 512, %s5285_s26, %s5287_s10, %s5105_s11, %s5105_s11, %s5106_s18  }
  0x63   : > { %209 = sbr.rel (%p5184_p8) target bundleno = 858 (0x35a), region = 32  ;;  %s5318_s25 = sand.u32 (!%p5184_p8), 1, %s5080_s13  }
  0x64   : > { %s4232_s27 = sshll.u32 (!%p5184_p8), %s5318_s25, 5  ;;  %s212_s29 = scalar_lea.sflag (!%p5184_p8), [#allocation3], %s5318_s25 }
  0x65   : > { %s5322_s4 = scalar_lea.vmem (!%p5184_p8), [#allocation2], %s4232_s27  ;;  %p5497_p7 = scmp.ne.s32.totalorder (!%p5184_p8), %s5491_s22, 0 }
  0x6a   : > { %5063 = dma.done.wait (%p5497_p7), %s212_s29, 512  }
  0x6b   : > { %5065 = vsyncadd (%p5497_p7), %s212_s29, 4294966784  ;;  %p5498_p2 = scmp.ne.s32.totalorder %s5489_s20, 0 }
  0x6d   : > { %5067 = dma.done.wait (%p5498_p2), [#allocation6], 69632  }
  0x6e   : > { %5069 = vsyncadd (%p5498_p2), [#allocation6], 4294897664  ;;  %v253_v0 = vld [vmem:[#allocation5] sm:$0xff]  ;;  %v254_v2 = vld [vmem:[#allocation5 + $0x8] sm:$0xff]  ;;  %s4235_s20 = sshll.u32 %s5318_s25, 8  ;;  %s4758_s24 = sshll.u32 %s5088_s15, 12 }
  0x6f   : > { %v261_v1 = vld [vmem:[#allocation5 + $0x40] sm:$0xff]  ;;  %v262_v4 = vld [vmem:[#allocation5 + $0x48] sm:$0xff]  ;;  %s5378_s22 = scalar_lea.vmem [#allocation8], %s4235_s20  ;;  %s5425_s9 = scalar_lea.hbm %s5484_s3, %s4758_s24 }
  0x70   : > { %v4241_v3 = vcombine.high %v253_v0, %v261_v1  ;;  %v4240_v5 = vcombine.low %v253_v0, %v261_v1  ;;  %v269_v6 = vld [vmem:[#allocation5 + $0x80] sm:$0xff]  ;;  %v4243_v8 = vcombine.high %v254_v2, %v262_v4  ;;  %v4242_v9 = vcombine.low %v254_v2, %v262_v4  ;;  %v270_v11 = vld [vmem:[#allocation5 + $0x88] sm:$0xff]  ;;  %s4114_s8 = sshll.u32 %s5378_s22, 4  ;;  %s4098_s10 = scalar_lea.sflag [#allocation4], %s5318_s25  ;;  %s5427_s8 = int_to_ptr.vmem [resolvable:$true] %s4114_s8 }
  0x71   : > { %v277_v7 = vld [vmem:[#allocation5 + $0xc0] sm:$0xff]  ;;  %v278_v12 = vld [vmem:[#allocation5 + $0xc8] sm:$0xff]  ;;  %s5010_s30 = scalar_lea.vmem %s5427_s8, 4096  ;;  %p5499_p12 = scmp.ne.s32.totalorder %s5495_s28, 0 }
  0x72   : > { %v4257_v10 = vcombine.high %v269_v6, %v277_v7  ;;  %v285_v13 = vld [vmem:[#allocation5 + $0x100] sm:$0xff]  ;;  %3377 = vmatprep.subr.bf16.mxu0 %v4241_v3  ;;  %v4259_v14 = vcombine.high %v270_v11, %v278_v12  ;;  %v286_v16 = vld [vmem:[#allocation5 + $0x108] sm:$0xff]  ;;  %3463 = vmatprep.subr.bf16.mxu1 %v4243_v8  ;;  %v4256_v18 = vcombine.low %v269_v6, %v277_v7  ;;  %p5011_p8 = scmp.ne.s32.totalorder %s5427_s8, %s5010_s30  ;;  %s5107_s6 = smov [#allocation8]  }
  0x73   : > { %v293_v15 = vld [vmem:[#allocation5 + $0x140] sm:$0xff]  ;;  %v294_v17 = vld [vmem:[#allocation5 + $0x148] sm:$0xff]  ;;  %3378 = vmatpush1.bf16.msra.mxu0 %v4240_v5  ;;  %3464 = vmatpush1.bf16.msra.mxu1 %v4242_v9  ;;  %v4258_v19 = vcombine.low %v270_v11, %v278_v12  ;;  %s5014_s7 = sshll.u32 %s5107_s6, 4  ;;  %s5015_s7 = int_to_ptr.vmem [resolvable:$false] %s5014_s7 }
  0x74   : > { %3379 = vmatprep.subr.bf16.mxu0 %v4257_v10  ;;  %v4273_v20 = vcombine.high %v285_v13, %v293_v15  ;;  %3465 = vmatprep.subr.bf16.mxu1 %v4259_v14  ;;  %v4275_v21 = vcombine.high %v286_v16, %v294_v17  ;;  %v301_v22 = vld [vmem:[#allocation5 + $0x180] sm:$0xff]  ;;  %v302_v24 = vld [vmem:[#allocation5 + $0x188] sm:$0xff]  ;;  %v4272_v26 = vcombine.low %v285_v13, %v293_v15  ;;  %p5012_p1 = pnand %p5011_p8, %p5499_p12  ;;  %s5016_s21 = scalar_lea.vmem %s5015_s7, 8192 }
  0x75   : > { %v309_v23 = vld [vmem:[#allocation5 + $0x1c0] sm:$0xff]  ;;  %v310_v25 = vld [vmem:[#allocation5 + $0x1c8] sm:$0xff]  ;;  %v4274_v27 = vcombine.low %v286_v16, %v294_v17  ;;  %p5017_p3 = scmp.lt.s32.totalorder %s5427_s8, %s5015_s7  ;;  %p5018_p5 = scmp.lt.s32.totalorder %s5016_s21, %s5010_s30 }
  0x76   : > { %v4289_v28 = vcombine.high %v301_v22, %v309_v23  ;;  %v4291_v29 = vcombine.high %v302_v24, %v310_v25  ;;  %v317_v30 = vld [vmem:[#allocation5 + $0x200] sm:$0xff]  ;;  %v318_v32 = vld [vmem:[#allocation5 + $0x208] sm:$0xff]  ;;  %v4288_v34 = vcombine.low %v301_v22, %v309_v23  ;;  %v4290_v35 = vcombine.low %v302_v24, %v310_v25  ;;  %p5013_p10 = pneg %p5012_p1 }
  0x77   : > { %3380 = vmatpush1.bf16.msra.mxu0 %v4256_v18  ;;  %3466 = vmatpush1.bf16.msra.mxu1 %v4258_v19  ;;  %v325_v31 = vld [vmem:[#allocation5 + $0x240] sm:$0xff]  ;;  %v326_v33 = vld [vmem:[#allocation5 + $0x248] sm:$0xff]  ;;  %p5019_p9 = por %p5018_p5, %p5017_p3 }
  0x78   : > { %3381 = vmatprep.subr.bf16.mxu0 %v4273_v20  ;;  %3467 = vmatprep.subr.bf16.mxu1 %v4275_v21  ;;  %v4305_v36 = vcombine.high %v317_v30, %v325_v31  ;;  %v4307_v37 = vcombine.high %v318_v32, %v326_v33  ;;  %v333_v38 = vld [vmem:[#allocation5 + $0x280] sm:$0xff]  ;;  %v334_v40 = vld [vmem:[#allocation5 + $0x288] sm:$0xff]  ;;  %v4304_v42 = vcombine.low %v317_v30, %v325_v31 }
  0x79   : > { %v341_v39 = vld [vmem:[#allocation5 + $0x2c0] sm:$0xff]  ;;  %v342_v41 = vld [vmem:[#allocation5 + $0x2c8] sm:$0xff]  ;;  %v4306_v43 = vcombine.low %v318_v32, %v326_v33  ;;  %p5020_p11 = pnand %p5019_p9, %p5013_p10 }
  0x7a   : > { %v4321_v44 = vcombine.high %v333_v38, %v341_v39  ;;  %v4323_v45 = vcombine.high %v334_v40, %v342_v41  ;;  %v349_v46 = vld [vmem:[#allocation5 + $0x300] sm:$0xff]  ;;  %v350_v48 = vld [vmem:[#allocation5 + $0x308] sm:$0xff]  ;;  %v4320_v50 = vcombine.low %v333_v38, %v341_v39  ;;  %v4322_v51 = vcombine.low %v334_v40, %v342_v41 }
  0x7b   : > { %3382 = vmatpush1.bf16.msra.mxu0 %v4272_v26  ;;  %3468 = vmatpush1.bf16.msra.mxu1 %v4274_v27  ;;  %v357_v47 = vld [vmem:[#allocation5 + $0x340] sm:$0xff]  ;;  %v358_v49 = vld [vmem:[#allocation5 + $0x348] sm:$0xff] }
  0x7c   : > { %3383 = vmatprep.subr.bf16.mxu0 %v4289_v28  ;;  %3469 = vmatprep.subr.bf16.mxu1 %v4291_v29  ;;  %v4337_v52 = vcombine.high %v349_v46, %v357_v47  ;;  %v4339_v53 = vcombine.high %v350_v48, %v358_v49  ;;  %v365_v54 = vld [vmem:[#allocation5 + $0x380] sm:$0xff]  ;;  %v366_v57 = vld [vmem:[#allocation5 + $0x388] sm:$0xff]  ;;  %v4336_v59 = vcombine.low %v349_v46, %v357_v47 }
  0x7d   : > { %v373_v55 = vld [vmem:[#allocation5 + $0x3c0] sm:$0xff]  ;;  %v374_v58 = vld [vmem:[#allocation5 + $0x3c8] sm:$0xff]  ;;  %v4338_v60 = vcombine.low %v350_v48, %v358_v49 }
  0x7e   : > { %v5333_v56 = vld [vmem:[%s5322_s4 + $0x4] ss:$16 sps:$4 sm:$0xff]   ;;  %v4353_v61 = vcombine.high %v365_v54, %v373_v55  ;;  %v4355_v62 = vcombine.high %v366_v57, %v374_v58  ;;  %v382_v1 = vld [vmem:[#allocation5 + $0x408] sm:$0xff]  ;;  %v4352_v3 = vcombine.low %v365_v54, %v373_v55  ;;  %v4354_v4 = vcombine.low %v366_v57, %v374_v58 }
  0x7f   : > { %3384 = vmatpush1.bf16.msra.mxu0 %v4288_v34  ;;  %3470 = vmatpush1.bf16.msra.mxu1 %v4290_v35  ;;  %v381_v63 = vld [vmem:[#allocation5 + $0x400] sm:$0xff]  ;;  %v390_v2 = vld [vmem:[#allocation5 + $0x448] sm:$0xff] }
  0x80   : > { %3385 = vmatprep.subr.bf16.mxu0 %v4305_v36  ;;  %3471 = vmatprep.subr.bf16.mxu1 %v4307_v37  ;;  %v389_v0 = vld [vmem:[#allocation5 + $0x440] sm:$0xff]  ;;  %v4371_v6 = vcombine.high %v382_v1, %v390_v2  ;;  %v398_v9 = vld [vmem:[#allocation5 + $0x488] sm:$0xff]  ;;  %v4370_v12 = vcombine.low %v382_v1, %v390_v2 }
  0x81   : > { %3409 = vmatprep.mubr.bf16.mxu0 %v5333_v56  ;;  %3495 = vmatprep.mubr.bf16.mxu1 %v5333_v56  ;;  %v4369_v5 = vcombine.high %v381_v63, %v389_v0  ;;  %v397_v7 = vld [vmem:[#allocation5 + $0x480] sm:$0xff]  ;;  %v406_v10 = vld [vmem:[#allocation5 + $0x4c8] sm:$0xff]  ;;  %v4368_v11 = vcombine.low %v381_v63, %v389_v0 }
  0x82   : > { %v405_v8 = vld [vmem:[#allocation5 + $0x4c0] sm:$0xff]  ;;  %v4387_v14 = vcombine.high %v398_v9, %v406_v10  ;;  %v414_v17 = vld [vmem:[#allocation5 + $0x508] sm:$0xff]  ;;  %v4386_v20 = vcombine.low %v398_v9, %v406_v10 }
  0x83   : > { %3386 = vmatpush1.bf16.msra.mxu0 %v4304_v42  ;;  %3472 = vmatpush1.bf16.msra.mxu1 %v4306_v43  ;;  %v4385_v13 = vcombine.high %v397_v7, %v405_v8  ;;  %v413_v15 = vld [vmem:[#allocation5 + $0x500] sm:$0xff]  ;;  %v422_v18 = vld [vmem:[#allocation5 + $0x548] sm:$0xff]  ;;  %v4384_v19 = vcombine.low %v397_v7, %v405_v8 }
  0x84   : > { %3387 = vmatprep.subr.bf16.mxu0 %v4321_v44  ;;  %3473 = vmatprep.subr.bf16.mxu1 %v4323_v45  ;;  %v421_v16 = vld [vmem:[#allocation5 + $0x540] sm:$0xff]  ;;  %v4403_v22 = vcombine.high %v414_v17, %v422_v18  ;;  %v430_v25 = vld [vmem:[#allocation5 + $0x588] sm:$0xff]  ;;  %v4402_v28 = vcombine.low %v414_v17, %v422_v18 }
  0x85   : > { %v4401_v21 = vcombine.high %v413_v15, %v421_v16  ;;  %v429_v23 = vld [vmem:[#allocation5 + $0x580] sm:$0xff]  ;;  %v438_v26 = vld [vmem:[#allocation5 + $0x5c8] sm:$0xff]  ;;  %v4400_v27 = vcombine.low %v413_v15, %v421_v16 }
  0x86   : > { %v437_v24 = vld [vmem:[#allocation5 + $0x5c0] sm:$0xff]  ;;  %v4419_v30 = vcombine.high %v430_v25, %v438_v26  ;;  %v446_v33 = vld [vmem:[#allocation5 + $0x608] sm:$0xff]  ;;  %v4418_v36 = vcombine.low %v430_v25, %v438_v26 }
  0x87   : > { %3388 = vmatpush1.bf16.msra.mxu0 %v4320_v50  ;;  %3474 = vmatpush1.bf16.msra.mxu1 %v4322_v51  ;;  %v4417_v29 = vcombine.high %v429_v23, %v437_v24  ;;  %v445_v31 = vld [vmem:[#allocation5 + $0x600] sm:$0xff]  ;;  %v454_v34 = vld [vmem:[#allocation5 + $0x648] sm:$0xff]  ;;  %v4416_v35 = vcombine.low %v429_v23, %v437_v24 }
  0x88   : > { %3389 = vmatprep.subr.bf16.mxu0 %v4337_v52  ;;  %3475 = vmatprep.subr.bf16.mxu1 %v4339_v53  ;;  %v453_v32 = vld [vmem:[#allocation5 + $0x640] sm:$0xff]  ;;  %v4435_v38 = vcombine.high %v446_v33, %v454_v34  ;;  %v462_v41 = vld [vmem:[#allocation5 + $0x688] sm:$0xff]  ;;  %v4434_v44 = vcombine.low %v446_v33, %v454_v34 }
  0x89   : > { %v4433_v37 = vcombine.high %v445_v31, %v453_v32  ;;  %v461_v39 = vld [vmem:[#allocation5 + $0x680] sm:$0xff]  ;;  %v470_v42 = vld [vmem:[#allocation5 + $0x6c8] sm:$0xff]  ;;  %v4432_v43 = vcombine.low %v445_v31, %v453_v32 }
  0x8a   : > { %v469_v40 = vld [vmem:[#allocation5 + $0x6c0] sm:$0xff]  ;;  %v4451_v46 = vcombine.high %v462_v41, %v470_v42  ;;  %v478_v49 = vld [vmem:[#allocation5 + $0x708] sm:$0xff]  ;;  %v4450_v52 = vcombine.low %v462_v41, %v470_v42 }
  0x8b   : > { %3390 = vmatpush1.bf16.msra.mxu0 %v4336_v59  ;;  %3476 = vmatpush1.bf16.msra.mxu1 %v4338_v60  ;;  %v4449_v45 = vcombine.high %v461_v39, %v469_v40  ;;  %v477_v47 = vld [vmem:[#allocation5 + $0x700] sm:$0xff]  ;;  %v486_v50 = vld [vmem:[#allocation5 + $0x748] sm:$0xff]  ;;  %v4448_v51 = vcombine.low %v461_v39, %v469_v40 }
  0x8c   : > { %3391 = vmatprep.subr.bf16.mxu0 %v4353_v61  ;;  %3477 = vmatprep.subr.bf16.mxu1 %v4355_v62  ;;  %v485_v48 = vld [vmem:[#allocation5 + $0x740] sm:$0xff]  ;;  %v4467_v54 = vcombine.high %v478_v49, %v486_v50  ;;  %v494_v58 = vld [vmem:[#allocation5 + $0x788] sm:$0xff]  ;;  %v4466_v61 = vcombine.low %v478_v49, %v486_v50 }
  0x8d   : > { %v4465_v53 = vcombine.high %v477_v47, %v485_v48  ;;  %v493_v55 = vld [vmem:[#allocation5 + $0x780] sm:$0xff]  ;;  %v502_v59 = vld [vmem:[#allocation5 + $0x7c8] sm:$0xff]  ;;  %v4464_v60 = vcombine.low %v477_v47, %v485_v48 }
  0x8e   : > { %v501_v57 = vld [vmem:[#allocation5 + $0x7c0] sm:$0xff]  ;;  %v4483_v63 = vcombine.high %v494_v58, %v502_v59  ;;  %v510_v2 = vld [vmem:[#allocation5 + $0x808] sm:$0xff] }
  0x8f   : > { %3392 = vmatpush1.bf16.msra.mxu0 %v4352_v3  ;;  %3478 = vmatpush1.bf16.msra.mxu1 %v4354_v4  ;;  %v4481_v62 = vcombine.high %v493_v55, %v501_v57  ;;  %v509_v0 = vld [vmem:[#allocation5 + $0x800] sm:$0xff]  ;;  %v518_v3 = vld [vmem:[#allocation5 + $0x848] sm:$0xff]  ;;  %v4480_v4 = vcombine.low %v493_v55, %v501_v57 }
  0x90   : > { %3393 = vmatprep.subr.bf16.mxu0 %v4369_v5  ;;  %3479 = vmatprep.subr.bf16.mxu1 %v4371_v6  ;;  %v517_v1 = vld [vmem:[#allocation5 + $0x840] sm:$0xff]  ;;  %v4482_v5 = vcombine.low %v494_v58, %v502_v59  ;;  %v4499_v7 = vcombine.high %v510_v2, %v518_v3 }
  0x91   : > { %v4497_v6 = vcombine.high %v509_v0, %v517_v1  ;;  %v525_v8 = vld [vmem:[#allocation5 + $0x880] sm:$0xff] }
  0x92   : > { %v533_v9 = vld [vmem:[#allocation5 + $0x8c0] sm:$0xff] }
  0x93   : > { %3394 = vmatpush1.bf16.msra.mxu0 %v4368_v11  ;;  %3480 = vmatpush1.bf16.msra.mxu1 %v4370_v12  ;;  %v5338_v10 = vld [vmem:[%s5322_s4] ss:$16 sps:$4 sm:$0xff]   ;;  %v526_v11 = vld [vmem:[#allocation5 + $0x888] sm:$0xff]  ;;  %v4513_v15 = vcombine.high %v525_v8, %v533_v9 }
  0x94   : > { %3395 = vmatprep.subr.bf16.mxu0 %v4385_v13  ;;  %3481 = vmatprep.subr.bf16.mxu1 %v4387_v14  ;;  %v534_v12 = vld [vmem:[#allocation5 + $0x8c8] sm:$0xff]  ;;  %v4496_v13 = vcombine.low %v509_v0, %v517_v1  ;;  %v4498_v14 = vcombine.low %v510_v2, %v518_v3  ;;  %v541_v17 = vld [vmem:[#allocation5 + $0x900] sm:$0xff] }
  0x95   : > { %v4515_v16 = vcombine.high %v526_v11, %v534_v12  ;;  %v549_v18 = vld [vmem:[#allocation5 + $0x940] sm:$0xff]  ;;  %v4514_v23 = vcombine.low %v526_v11, %v534_v12 }
  0x96   : > { %v4529_v24 = vcombine.high %v541_v17, %v549_v18  ;;  %v557_v26 = vld [vmem:[#allocation5 + $0x980] sm:$0xff] }
  0x97   : > { %3396 = vmatpush1.bf16.msra.mxu0 %v4384_v19  ;;  %3482 = vmatpush1.bf16.msra.mxu1 %v4386_v20  ;;  %v5341_v19 = vld [vmem:[%s5322_s4 + $0xc] ss:$16 sps:$4 sm:$0xff]   ;;  %v573_v34 = vld [vmem:[#allocation5 + $0xa00] sm:$0xff] }
  0x98   : > { %3397 = vmatprep.subr.bf16.mxu0 %v4401_v21  ;;  %3483 = vmatprep.subr.bf16.mxu1 %v4403_v22  ;;  %v542_v20 = vld [vmem:[#allocation5 + $0x908] sm:$0xff]  ;;  %v4512_v22 = vcombine.low %v525_v8, %v533_v9  ;;  %v589_v42 = vld [vmem:[#allocation5 + $0xa80] sm:$0xff] }
  0x99   : > { %v550_v21 = vld [vmem:[#allocation5 + $0x948] sm:$0xff]  ;;  %v605_v50 = vld [vmem:[#allocation5 + $0xb00] sm:$0xff] }
  0x9a   : > { %v4531_v25 = vcombine.high %v542_v20, %v550_v21  ;;  %v4530_v31 = vcombine.low %v542_v20, %v550_v21  ;;  %v621_v59 = vld [vmem:[#allocation5 + $0xb80] sm:$0xff] }
  0x9b   : > { %3398 = vmatpush1.bf16.msra.mxu0 %v4400_v27  ;;  %3484 = vmatpush1.bf16.msra.mxu1 %v4402_v28  ;;  %v565_v27 = vld [vmem:[#allocation5 + $0x9c0] sm:$0xff]  ;;  %v558_v28 = vld [vmem:[#allocation5 + $0x988] sm:$0xff] }
  0x9c   : > { %3399 = vmatprep.subr.bf16.mxu0 %v4417_v29  ;;  %3485 = vmatprep.subr.bf16.mxu1 %v4419_v30  ;;  %v566_v29 = vld [vmem:[#allocation5 + $0x9c8] sm:$0xff]  ;;  %v4528_v30 = vcombine.low %v541_v17, %v549_v18  ;;  %v4545_v32 = vcombine.high %v557_v26, %v565_v27  ;;  %v637_v3 = vld [vmem:[#allocation5 + $0xc00] sm:$0xff] }
  0x9d   : > { %v4547_v33 = vcombine.high %v558_v28, %v566_v29  ;;  %v4546_v39 = vcombine.low %v558_v28, %v566_v29  ;;  %v653_v12 = vld [vmem:[#allocation5 + $0xc80] sm:$0xff] }
  0x9e   : > { %v669_v21 = vld [vmem:[#allocation5 + $0xd00] sm:$0xff] }
  0x9f   : > { %3400 = vmatpush1.bf16.msra.mxu0 %v4416_v35  ;;  %3486 = vmatpush1.bf16.msra.mxu1 %v4418_v36  ;;  %v581_v35 = vld [vmem:[#allocation5 + $0xa40] sm:$0xff]  ;;  %v574_v36 = vld [vmem:[#allocation5 + $0xa08] sm:$0xff] }
  0xa0   : > { %3401 = vmatprep.subr.bf16.mxu0 %v4433_v37  ;;  %3487 = vmatprep.subr.bf16.mxu1 %v4435_v38  ;;  %v582_v37 = vld [vmem:[#allocation5 + $0xa48] sm:$0xff]  ;;  %v4544_v38 = vcombine.low %v557_v26, %v565_v27  ;;  %v4561_v40 = vcombine.high %v573_v34, %v581_v35  ;;  %v685_v29 = vld [vmem:[#allocation5 + $0xd80] sm:$0xff] }
  0xa1   : > { %v4563_v41 = vcombine.high %v574_v36, %v582_v37  ;;  %v4562_v47 = vcombine.low %v574_v36, %v582_v37  ;;  %v701_v37 = vld [vmem:[#allocation5 + $0xe00] sm:$0xff] }
  0xa3   : > { %3402 = vmatpush1.bf16.msra.mxu0 %v4432_v43  ;;  %3488 = vmatpush1.bf16.msra.mxu1 %v4434_v44  ;;  %v597_v43 = vld [vmem:[#allocation5 + $0xac0] sm:$0xff]  ;;  %v590_v44 = vld [vmem:[#allocation5 + $0xa88] sm:$0xff] }
  0xa4   : > { %3403 = vmatprep.subr.bf16.mxu0 %v4449_v45  ;;  %3489 = vmatprep.subr.bf16.mxu1 %v4451_v46  ;;  %v598_v45 = vld [vmem:[#allocation5 + $0xac8] sm:$0xff]  ;;  %v4560_v46 = vcombine.low %v573_v34, %v581_v35  ;;  %v4577_v48 = vcombine.high %v589_v42, %v597_v43 }
  0xa5   : > { %v4579_v49 = vcombine.high %v590_v44, %v598_v45  ;;  %v4578_v55 = vcombine.low %v590_v44, %v598_v45  ;;  %v717_v45 = vld [vmem:[#allocation5 + $0xe80] sm:$0xff] }
  0xa7   : > { %3404 = vmatpush1.bf16.msra.mxu0 %v4448_v51  ;;  %3490 = vmatpush1.bf16.msra.mxu1 %v4450_v52  ;;  %v613_v51 = vld [vmem:[#allocation5 + $0xb40] sm:$0xff]  ;;  %v606_v52 = vld [vmem:[#allocation5 + $0xb08] sm:$0xff] }
  0xa8   : > { %3405 = vmatprep.subr.bf16.mxu0 %v4465_v53  ;;  %3491 = vmatprep.subr.bf16.mxu1 %v4467_v54  ;;  %v614_v53 = vld [vmem:[#allocation5 + $0xb48] sm:$0xff]  ;;  %v4576_v54 = vcombine.low %v589_v42, %v597_v43  ;;  %v4593_v57 = vcombine.high %v605_v50, %v613_v51 }
  0xa9   : > { %v4595_v58 = vcombine.high %v606_v52, %v614_v53  ;;  %v4594_v0 = vcombine.low %v606_v52, %v614_v53  ;;  %v733_v53 = vld [vmem:[#allocation5 + $0xf00] sm:$0xff] }
  0xab   : > { %3406 = vmatpush1.bf16.msra.mxu0 %v4464_v60  ;;  %3492 = vmatpush1.bf16.msra.mxu1 %v4466_v61  ;;  %v629_v60 = vld [vmem:[#allocation5 + $0xbc0] sm:$0xff]  ;;  %v622_v61 = vld [vmem:[#allocation5 + $0xb88] sm:$0xff] }
  0xac   : > { %3407 = vmatprep.subr.bf16.mxu0 %v4481_v62  ;;  %3493 = vmatprep.subr.bf16.mxu1 %v4483_v63  ;;  %v630_v62 = vld [vmem:[#allocation5 + $0xbc8] sm:$0xff]  ;;  %v4592_v63 = vcombine.low %v605_v50, %v613_v51  ;;  %v4609_v1 = vcombine.high %v621_v59, %v629_v60 }
  0xad   : > { %v4611_v2 = vcombine.high %v622_v61, %v630_v62  ;;  %v4610_v8 = vcombine.low %v622_v61, %v630_v62  ;;  %v749_v62 = vld [vmem:[#allocation5 + $0xf80] sm:$0xff] }
  0xaf   : > { %3408 = vmatpush1.bf16.msra.mxu0 %v4480_v4  ;;  %3494 = vmatpush1.bf16.msra.mxu1 %v4482_v5  ;;  %v645_v4 = vld [vmem:[#allocation5 + $0xc40] sm:$0xff]  ;;  %v638_v5 = vld [vmem:[#allocation5 + $0xc08] sm:$0xff] }
  0xb0   : > { %3420 = vmatprep.subr.bf16.mxu0 %v4497_v6  ;;  %3506 = vmatprep.subr.bf16.mxu1 %v4499_v7  ;;  %v646_v6 = vld [vmem:[#allocation5 + $0xc48] sm:$0xff]  ;;  %v4608_v7 = vcombine.low %v621_v59, %v629_v60  ;;  %v4625_v9 = vcombine.high %v637_v3, %v645_v4 }
  0xb1   : > { %v4627_v11 = vcombine.high %v638_v5, %v646_v6  ;;  %v4626_v17 = vcombine.low %v638_v5, %v646_v6  ;;  %v255_v6 = vld [vmem:[#allocation5 + $0x10] sm:$0xff] }
  0xb2   : > { %3410 = vmatmul.mubr.bf16.vlgmr.msra.gmra.mrb[0].mxu0 %v5338_v10  ;;  %3496 = vmatmul.mubr.bf16.vlgmr.msra.gmra.mrb[0].mxu1 %v5338_v10 }
  0xb3   : > { %3421 = vmatpush1.bf16.msra.mxu0 %v4496_v13  ;;  %3507 = vmatpush1.bf16.msra.mxu1 %v4498_v14  ;;  %v661_v13 = vld [vmem:[#allocation5 + $0xcc0] sm:$0xff]  ;;  %v654_v14 = vld [vmem:[#allocation5 + $0xc88] sm:$0xff] }
  0xb4   : > { %3422 = vmatprep.subr.bf16.mxu0 %v4513_v15  ;;  %3508 = vmatprep.subr.bf16.mxu1 %v4515_v16  ;;  %v662_v15 = vld [vmem:[#allocation5 + $0xcc8] sm:$0xff]  ;;  %v4624_v16 = vcombine.low %v637_v3, %v645_v4  ;;  %v4641_v18 = vcombine.high %v653_v12, %v661_v13 }
  0xb5   : > { %3452 = vmatprep.mubr.bf16.mxu0 %v5341_v19  ;;  %3538 = vmatprep.mubr.bf16.mxu1 %v5341_v19  ;;  %v4643_v20 = vcombine.high %v654_v14, %v662_v15  ;;  %v4642_v26 = vcombine.low %v654_v14, %v662_v15  ;;  %v271_v15 = vld [vmem:[#allocation5 + $0x90] sm:$0xff] }
  0xb7   : > { %3423 = vmatpush1.bf16.msra.mxu0 %v4512_v22  ;;  %3509 = vmatpush1.bf16.msra.mxu1 %v4514_v23  ;;  %v677_v22 = vld [vmem:[#allocation5 + $0xd40] sm:$0xff]  ;;  %v670_v23 = vld [vmem:[#allocation5 + $0xd08] sm:$0xff] }
  0xb8   : > { %3424 = vmatprep.subr.bf16.mxu0 %v4529_v24  ;;  %3510 = vmatprep.subr.bf16.mxu1 %v4531_v25  ;;  %v678_v24 = vld [vmem:[#allocation5 + $0xd48] sm:$0xff]  ;;  %v4640_v25 = vcombine.low %v653_v12, %v661_v13  ;;  %v4657_v27 = vcombine.high %v669_v21, %v677_v22 }
  0xb9   : > { %v4659_v28 = vcombine.high %v670_v23, %v678_v24  ;;  %v4658_v34 = vcombine.low %v670_v23, %v678_v24 }
  0xbb   : > { %3425 = vmatpush1.bf16.msra.mxu0 %v4528_v30  ;;  %3511 = vmatpush1.bf16.msra.mxu1 %v4530_v31  ;;  %v693_v30 = vld [vmem:[#allocation5 + $0xdc0] sm:$0xff]  ;;  %v686_v31 = vld [vmem:[#allocation5 + $0xd88] sm:$0xff] }
  0xbc   : > { %3426 = vmatprep.subr.bf16.mxu0 %v4545_v32  ;;  %3512 = vmatprep.subr.bf16.mxu1 %v4547_v33  ;;  %v694_v32 = vld [vmem:[#allocation5 + $0xdc8] sm:$0xff]  ;;  %v4656_v33 = vcombine.low %v669_v21, %v677_v22  ;;  %v4673_v35 = vcombine.high %v685_v29, %v693_v30 }
  0xbd   : > { %v4675_v36 = vcombine.high %v686_v31, %v694_v32  ;;  %v4674_v42 = vcombine.low %v686_v31, %v694_v32 }
  0xbf   : > { %3427 = vmatpush1.bf16.msra.mxu0 %v4544_v38  ;;  %3513 = vmatpush1.bf16.msra.mxu1 %v4546_v39  ;;  %v709_v38 = vld [vmem:[#allocation5 + $0xe40] sm:$0xff]  ;;  %v702_v39 = vld [vmem:[#allocation5 + $0xe08] sm:$0xff] }
  0xc0   : > { %3428 = vmatprep.subr.bf16.mxu0 %v4561_v40  ;;  %3514 = vmatprep.subr.bf16.mxu1 %v4563_v41  ;;  %v710_v40 = vld [vmem:[#allocation5 + $0xe48] sm:$0xff]  ;;  %v4672_v41 = vcombine.low %v685_v29, %v693_v30  ;;  %v4689_v43 = vcombine.high %v701_v37, %v709_v38 }
  0xc1   : > { %v4691_v44 = vcombine.high %v702_v39, %v710_v40  ;;  %v4690_v50 = vcombine.low %v702_v39, %v710_v40 }
  0xc3   : > { %3429 = vmatpush1.bf16.msra.mxu0 %v4560_v46  ;;  %3515 = vmatpush1.bf16.msra.mxu1 %v4562_v47  ;;  %v725_v46 = vld [vmem:[#allocation5 + $0xec0] sm:$0xff]  ;;  %v718_v47 = vld [vmem:[#allocation5 + $0xe88] sm:$0xff] }
  0xc4   : > { %3430 = vmatprep.subr.bf16.mxu0 %v4577_v48  ;;  %3516 = vmatprep.subr.bf16.mxu1 %v4579_v49  ;;  %v726_v48 = vld [vmem:[#allocation5 + $0xec8] sm:$0xff]  ;;  %v4688_v49 = vcombine.low %v701_v37, %v709_v38  ;;  %v4705_v51 = vcombine.high %v717_v45, %v725_v46 }
  0xc5   : > { %v4707_v52 = vcombine.high %v718_v47, %v726_v48  ;;  %v4706_v59 = vcombine.low %v718_v47, %v726_v48  ;;  %v335_v48 = vld [vmem:[#allocation5 + $0x290] sm:$0xff] }
  0xc7   : > { %3431 = vmatpush1.bf16.msra.mxu0 %v4576_v54  ;;  %3517 = vmatpush1.bf16.msra.mxu1 %v4578_v55  ;;  %v741_v54 = vld [vmem:[#allocation5 + $0xf40] sm:$0xff]  ;;  %v734_v55 = vld [vmem:[#allocation5 + $0xf08] sm:$0xff] }
  0xc8   : > { %3432 = vmatprep.subr.bf16.mxu0 %v4593_v57  ;;  %3518 = vmatprep.subr.bf16.mxu1 %v4595_v58  ;;  %v742_v57 = vld [vmem:[#allocation5 + $0xf48] sm:$0xff]  ;;  %v4704_v58 = vcombine.low %v717_v45, %v725_v46  ;;  %v4721_v60 = vcombine.high %v733_v53, %v741_v54 }
  0xc9   : > { %v4723_v61 = vcombine.high %v734_v55, %v742_v57  ;;  %v4722_v3 = vcombine.low %v734_v55, %v742_v57  ;;  %v351_v57 = vld [vmem:[#allocation5 + $0x310] sm:$0xff] }
  0xcb   : > { %3433 = vmatpush1.bf16.msra.mxu0 %v4592_v63  ;;  %3519 = vmatpush1.bf16.msra.mxu1 %v4594_v0  ;;  %v757_v63 = vld [vmem:[#allocation5 + $0xfc0] sm:$0xff]  ;;  %v750_v0 = vld [vmem:[#allocation5 + $0xf88] sm:$0xff] }
  0xcc   : > { %3434 = vmatprep.subr.bf16.mxu0 %v4609_v1  ;;  %3520 = vmatprep.subr.bf16.mxu1 %v4611_v2  ;;  %v758_v1 = vld [vmem:[#allocation5 + $0xfc8] sm:$0xff]  ;;  %v4720_v2 = vcombine.low %v733_v53, %v741_v54  ;;  %v4737_v4 = vcombine.high %v749_v62, %v757_v63 }
  0xcd   : > { %v4739_v5 = vcombine.high %v750_v0, %v758_v1  ;;  %v4738_v12 = vcombine.low %v750_v0, %v758_v1  ;;  %v367_v1 = vld [vmem:[#allocation5 + $0x390] sm:$0xff] }
  0xcf   : > { %3435 = vmatpush1.bf16.msra.mxu0 %v4608_v7  ;;  %3521 = vmatpush1.bf16.msra.mxu1 %v4610_v8  ;;  %v263_v7 = vld [vmem:[#allocation5 + $0x50] sm:$0xff]  ;;  %v256_v8 = vld [vmem:[#allocation5 + $0x18] sm:$0xff] }
  0xd0   : > { %3436 = vmatprep.subr.bf16.mxu0 %v4625_v9  ;;  %3522 = vmatprep.subr.bf16.mxu1 %v4627_v11  ;;  %v264_v9 = vld [vmem:[#allocation5 + $0x58] sm:$0xff]  ;;  %v4736_v11 = vcombine.low %v749_v62, %v757_v63  ;;  %v4245_v13 = vcombine.high %v255_v6, %v263_v7  ;;  %v4244_v21 = vcombine.low %v255_v6, %v263_v7 }
  0xd1   : > { %v4247_v14 = vcombine.high %v256_v8, %v264_v9  ;;  %v4246_v22 = vcombine.low %v256_v8, %v264_v9  ;;  %v383_v9 = vld [vmem:[#allocation5 + $0x410] sm:$0xff] }
  0xd3   : > { %3437 = vmatpush1.bf16.msra.mxu0 %v4624_v16  ;;  %3523 = vmatpush1.bf16.msra.mxu1 %v4626_v17  ;;  %v279_v16 = vld [vmem:[#allocation5 + $0xd0] sm:$0xff]  ;;  %v5348_v17 = vld [vmem:[%s5322_s4 + $0x8] ss:$16 sps:$4 sm:$0xff]  }
  0xd4   : > { %3438 = vmatprep.subr.bf16.mxu0 %v4641_v18  ;;  %3524 = vmatprep.subr.bf16.mxu1 %v4643_v20  ;;  %v272_v18 = vld [vmem:[#allocation5 + $0x98] sm:$0xff]  ;;  %v4261_v23 = vcombine.high %v271_v15, %v279_v16  ;;  %v4260_v29 = vcombine.low %v271_v15, %v279_v16 }
  0xd5   : > { %v280_v20 = vld [vmem:[#allocation5 + $0xd8] sm:$0xff] }
  0xd6   : > { %v4263_v24 = vcombine.high %v272_v18, %v280_v20  ;;  %v4262_v30 = vcombine.low %v272_v18, %v280_v20  ;;  %v399_v20 = vld [vmem:[#allocation5 + $0x490] sm:$0xff] }
  0xd7   : > { %3439 = vmatpush1.bf16.msra.mxu0 %v4640_v25  ;;  %3525 = vmatpush1.bf16.msra.mxu1 %v4642_v26  ;;  %v287_v25 = vld [vmem:[#allocation5 + $0x110] sm:$0xff] }
  0xd8   : > { %3440 = vmatprep.subr.bf16.mxu0 %v4657_v27  ;;  %3526 = vmatprep.subr.bf16.mxu1 %v4659_v28  ;;  %v295_v26 = vld [vmem:[#allocation5 + $0x150] sm:$0xff]  ;;  %v288_v27 = vld [vmem:[#allocation5 + $0x118] sm:$0xff] }
  0xd9   : > { %v296_v28 = vld [vmem:[#allocation5 + $0x158] sm:$0xff]  ;;  %v4277_v31 = vcombine.high %v287_v25, %v295_v26  ;;  %v4276_v37 = vcombine.low %v287_v25, %v295_v26 }
  0xda   : > { %v4279_v32 = vcombine.high %v288_v27, %v296_v28  ;;  %v4278_v38 = vcombine.low %v288_v27, %v296_v28  ;;  %v415_v28 = vld [vmem:[#allocation5 + $0x510] sm:$0xff] }
  0xdb   : > { %3441 = vmatpush1.bf16.msra.mxu0 %v4656_v33  ;;  %3527 = vmatpush1.bf16.msra.mxu1 %v4658_v34  ;;  %v303_v33 = vld [vmem:[#allocation5 + $0x190] sm:$0xff] }
  0xdc   : > { %3442 = vmatprep.subr.bf16.mxu0 %v4673_v35  ;;  %3528 = vmatprep.subr.bf16.mxu1 %v4675_v36  ;;  %v311_v34 = vld [vmem:[#allocation5 + $0x1d0] sm:$0xff]  ;;  %v304_v35 = vld [vmem:[#allocation5 + $0x198] sm:$0xff] }
  0xdd   : > { %v312_v36 = vld [vmem:[#allocation5 + $0x1d8] sm:$0xff]  ;;  %v4293_v39 = vcombine.high %v303_v33, %v311_v34  ;;  %v4292_v45 = vcombine.low %v303_v33, %v311_v34 }
  0xde   : > { %v4295_v40 = vcombine.high %v304_v35, %v312_v36  ;;  %v4294_v46 = vcombine.low %v304_v35, %v312_v36  ;;  %v431_v36 = vld [vmem:[#allocation5 + $0x590] sm:$0xff] }
  0xdf   : > { %3443 = vmatpush1.bf16.msra.mxu0 %v4672_v41  ;;  %3529 = vmatpush1.bf16.msra.mxu1 %v4674_v42  ;;  %v319_v41 = vld [vmem:[#allocation5 + $0x210] sm:$0xff] }
  0xe0   : > { %3444 = vmatprep.subr.bf16.mxu0 %v4689_v43  ;;  %3530 = vmatprep.subr.bf16.mxu1 %v4691_v44  ;;  %v327_v42 = vld [vmem:[#allocation5 + $0x250] sm:$0xff]  ;;  %v320_v43 = vld [vmem:[#allocation5 + $0x218] sm:$0xff] }
  0xe1   : > { %v328_v44 = vld [vmem:[#allocation5 + $0x258] sm:$0xff]  ;;  %v4309_v47 = vcombine.high %v319_v41, %v327_v42 }
  0xe2   : > { %v4310_v53 = vcombine.low %v320_v43, %v328_v44 }
  0xe3   : > { %3445 = vmatpush1.bf16.msra.mxu0 %v4688_v49  ;;  %3531 = vmatpush1.bf16.msra.mxu1 %v4690_v50  ;;  %v343_v49 = vld [vmem:[#allocation5 + $0x2d0] sm:$0xff]  ;;  %v336_v50 = vld [vmem:[#allocation5 + $0x298] sm:$0xff] }
  0xe4   : > { %3446 = vmatprep.subr.bf16.mxu0 %v4705_v51  ;;  %3532 = vmatprep.subr.bf16.mxu1 %v4707_v52  ;;  %v344_v51 = vld [vmem:[#allocation5 + $0x2d8] sm:$0xff]  ;;  %v4308_v52 = vcombine.low %v319_v41, %v327_v42  ;;  %v4325_v54 = vcombine.high %v335_v48, %v343_v49 }
  0xe5   : > { %v4327_v55 = vcombine.high %v336_v50, %v344_v51  ;;  %v4326_v62 = vcombine.low %v336_v50, %v344_v51  ;;  %v463_v51 = vld [vmem:[#allocation5 + $0x690] sm:$0xff] }
  0xe7   : > { %3447 = vmatpush1.bf16.msra.mxu0 %v4704_v58  ;;  %3533 = vmatpush1.bf16.msra.mxu1 %v4706_v59  ;;  %v359_v58 = vld [vmem:[#allocation5 + $0x350] sm:$0xff]  ;;  %v352_v59 = vld [vmem:[#allocation5 + $0x318] sm:$0xff] }
  0xe8   : > { %3448 = vmatprep.subr.bf16.mxu0 %v4721_v60  ;;  %3534 = vmatprep.subr.bf16.mxu1 %v4723_v61  ;;  %v360_v60 = vld [vmem:[#allocation5 + $0x358] sm:$0xff]  ;;  %v4324_v61 = vcombine.low %v335_v48, %v343_v49  ;;  %v4341_v63 = vcombine.high %v351_v57, %v359_v58 }
  0xe9   : > { %v4343_v0 = vcombine.high %v352_v59, %v360_v60  ;;  %v4342_v6 = vcombine.low %v352_v59, %v360_v60  ;;  %v479_v60 = vld [vmem:[#allocation5 + $0x710] sm:$0xff] }
  0xeb   : > { %3449 = vmatpush1.bf16.msra.mxu0 %v4720_v2  ;;  %3535 = vmatpush1.bf16.msra.mxu1 %v4722_v3  ;;  %v375_v2 = vld [vmem:[#allocation5 + $0x3d0] sm:$0xff]  ;;  %v368_v3 = vld [vmem:[#allocation5 + $0x398] sm:$0xff] }
  0xec   : > { %3450 = vmatprep.subr.bf16.mxu0 %v4737_v4  ;;  %3536 = vmatprep.subr.bf16.mxu1 %v4739_v5  ;;  %v376_v4 = vld [vmem:[#allocation5 + $0x3d8] sm:$0xff]  ;;  %v4340_v5 = vcombine.low %v351_v57, %v359_v58  ;;  %v4357_v7 = vcombine.high %v367_v1, %v375_v2 }
  0xed   : > { %v4359_v8 = vcombine.high %v368_v3, %v376_v4  ;;  %v4358_v15 = vcombine.low %v368_v3, %v376_v4  ;;  %v495_v4 = vld [vmem:[#allocation5 + $0x790] sm:$0xff] }
  0xef   : > { %3451 = vmatpush1.bf16.msra.mxu0 %v4736_v11  ;;  %3537 = vmatpush1.bf16.msra.mxu1 %v4738_v12  ;;  %v391_v11 = vld [vmem:[#allocation5 + $0x450] sm:$0xff]  ;;  %v384_v12 = vld [vmem:[#allocation5 + $0x418] sm:$0xff] }
  0xf0   : > { %3549 = vmatprep.subr.bf16.mxu0 %v4245_v13  ;;  %3635 = vmatprep.subr.bf16.mxu1 %v4247_v14  ;;  %v392_v13 = vld [vmem:[#allocation5 + $0x458] sm:$0xff]  ;;  %v4356_v14 = vcombine.low %v367_v1, %v375_v2  ;;  %v4373_v16 = vcombine.high %v383_v9, %v391_v11 }
  0xf1   : > { %v4375_v18 = vcombine.high %v384_v12, %v392_v13  ;;  %v4374_v25 = vcombine.low %v384_v12, %v392_v13  ;;  %v511_v13 = vld [vmem:[#allocation5 + $0x810] sm:$0xff] }
  0xf2   : > { %3453 = vmatmul.mubr.bf16.vlgmr.msra.gmra.mrb[0].mxu0 %v5348_v17  ;;  %3539 = vmatmul.mubr.bf16.vlgmr.msra.gmra.mrb[0].mxu1 %v5348_v17 }
  0xf3   : > { %3550 = vmatpush1.bf16.msra.mxu0 %v4244_v21  ;;  %3636 = vmatpush1.bf16.msra.mxu1 %v4246_v22  ;;  %v407_v21 = vld [vmem:[#allocation5 + $0x4d0] sm:$0xff]  ;;  %v400_v22 = vld [vmem:[#allocation5 + $0x498] sm:$0xff] }
  0xf4   : > { %3551 = vmatprep.subr.bf16.mxu0 %v4261_v23  ;;  %3637 = vmatprep.subr.bf16.mxu1 %v4263_v24  ;;  %v408_v23 = vld [vmem:[#allocation5 + $0x4d8] sm:$0xff]  ;;  %v4372_v24 = vcombine.low %v383_v9, %v391_v11  ;;  %v4389_v26 = vcombine.high %v399_v20, %v407_v21 }
  0xf5   : > { %3581 = vmatprep.mubr.bf16.mxu0 %v5333_v56  ;;  %3667 = vmatprep.mubr.bf16.mxu1 %v5333_v56  ;;  %v4311_v56 = vcombine.high %v320_v43, %v328_v44  ;;  %v4391_v27 = vcombine.high %v400_v22, %v408_v23  ;;  %v4390_v33 = vcombine.low %v400_v22, %v408_v23  ;;  %v447_v44 = vld [vmem:[#allocation5 + $0x610] sm:$0xff] }
  0xf6   : > { %v527_v23 = vld [vmem:[#allocation5 + $0x890] sm:$0xff] }
  0xf7   : > { %3552 = vmatpush1.bf16.msra.mxu0 %v4260_v29  ;;  %3638 = vmatpush1.bf16.msra.mxu1 %v4262_v30  ;;  %v423_v29 = vld [vmem:[#allocation5 + $0x550] sm:$0xff]  ;;  %v416_v30 = vld [vmem:[#allocation5 + $0x518] sm:$0xff] }
  0xf8   : > { %3553 = vmatprep.subr.bf16.mxu0 %v4277_v31  ;;  %3639 = vmatprep.subr.bf16.mxu1 %v4279_v32  ;;  %v424_v31 = vld [vmem:[#allocation5 + $0x558] sm:$0xff]  ;;  %v4388_v32 = vcombine.low %v399_v20, %v407_v21  ;;  %v4405_v34 = vcombine.high %v415_v28, %v423_v29 }
  0xf9   : > { %v4407_v35 = vcombine.high %v416_v30, %v424_v31  ;;  %v4406_v41 = vcombine.low %v416_v30, %v424_v31  ;;  %v543_v31 = vld [vmem:[#allocation5 + $0x910] sm:$0xff] }
  0xfb   : > { %3554 = vmatpush1.bf16.msra.mxu0 %v4276_v37  ;;  %3640 = vmatpush1.bf16.msra.mxu1 %v4278_v38  ;;  %v439_v37 = vld [vmem:[#allocation5 + $0x5d0] sm:$0xff]  ;;  %v432_v38 = vld [vmem:[#allocation5 + $0x598] sm:$0xff] }
  0xfc   : > { %3555 = vmatprep.subr.bf16.mxu0 %v4293_v39  ;;  %3641 = vmatprep.subr.bf16.mxu1 %v4295_v40  ;;  %v440_v39 = vld [vmem:[#allocation5 + $0x5d8] sm:$0xff]  ;;  %v4404_v40 = vcombine.low %v415_v28, %v423_v29  ;;  %v4421_v42 = vcombine.high %v431_v36, %v439_v37 }
  0xfd   : > { %v4423_v43 = vcombine.high %v432_v38, %v440_v39  ;;  %v4422_v48 = vcombine.low %v432_v38, %v440_v39  ;;  %v559_v39 = vld [vmem:[#allocation5 + $0x990] sm:$0xff] }
  0xff   : > { %3556 = vmatpush1.bf16.msra.mxu0 %v4292_v45  ;;  %3642 = vmatpush1.bf16.msra.mxu1 %v4294_v46  ;;  %v455_v45 = vld [vmem:[#allocation5 + $0x650] sm:$0xff]  ;;  %v448_v46 = vld [vmem:[#allocation5 + $0x618] sm:$0xff] }
 0x100   : > { %3557 = vmatprep.subr.bf16.mxu0 %v4309_v47  ;;  %3643 = vmatprep.subr.bf16.mxu1 %v4311_v56  ;;  %v456_v47 = vld [vmem:[#allocation5 + $0x658] sm:$0xff]  ;;  %v4420_v56 = vcombine.low %v431_v36, %v439_v37  ;;  %v4437_v49 = vcombine.high %v447_v44, %v455_v45 }
 0x101   : > { %v4439_v50 = vcombine.high %v448_v46, %v456_v47  ;;  %v4438_v57 = vcombine.low %v448_v46, %v456_v47  ;;  %v575_v46 = vld [vmem:[#allocation5 + $0xa10] sm:$0xff] }
 0x102   : > { %v583_v47 = vld [vmem:[#allocation5 + $0xa50] sm:$0xff] }
 0x103   : > { %3558 = vmatpush1.bf16.msra.mxu0 %v4308_v52  ;;  %3644 = vmatpush1.bf16.msra.mxu1 %v4310_v53  ;;  %v471_v52 = vld [vmem:[#allocation5 + $0x6d0] sm:$0xff]  ;;  %v464_v53 = vld [vmem:[#allocation5 + $0x698] sm:$0xff] }
 0x104   : > { %3559 = vmatprep.subr.bf16.mxu0 %v4325_v54  ;;  %3645 = vmatprep.subr.bf16.mxu1 %v4327_v55  ;;  %v472_v54 = vld [vmem:[#allocation5 + $0x6d8] sm:$0xff]  ;;  %v4436_v55 = vcombine.low %v447_v44, %v455_v45  ;;  %v4453_v58 = vcombine.high %v463_v51, %v471_v52 }
 0x105   : > { %v4455_v59 = vcombine.high %v464_v53, %v472_v54  ;;  %v4454_v1 = vcombine.low %v464_v53, %v472_v54  ;;  %v599_v53 = vld [vmem:[#allocation5 + $0xad0] sm:$0xff]  ;;  %v592_v54 = vld [vmem:[#allocation5 + $0xa98] sm:$0xff] }
 0x107   : > { %3560 = vmatpush1.bf16.msra.mxu0 %v4324_v61  ;;  %3646 = vmatpush1.bf16.msra.mxu1 %v4326_v62  ;;  %v487_v61 = vld [vmem:[#allocation5 + $0x750] sm:$0xff]  ;;  %v480_v62 = vld [vmem:[#allocation5 + $0x718] sm:$0xff] }
 0x108   : > { %3561 = vmatprep.subr.bf16.mxu0 %v4341_v63  ;;  %3647 = vmatprep.subr.bf16.mxu1 %v4343_v0  ;;  %v488_v63 = vld [vmem:[#allocation5 + $0x758] sm:$0xff]  ;;  %v4452_v0 = vcombine.low %v463_v51, %v471_v52  ;;  %v4469_v2 = vcombine.high %v479_v60, %v487_v61  ;;  %v4565_v51 = vcombine.high %v575_v46, %v583_v47  ;;  %v591_v52 = vld [vmem:[#allocation5 + $0xa90] sm:$0xff] }
 0x109   : > { %v4471_v3 = vcombine.high %v480_v62, %v488_v63  ;;  %v4470_v9 = vcombine.low %v480_v62, %v488_v63  ;;  %v615_v62 = vld [vmem:[#allocation5 + $0xb50] sm:$0xff]  ;;  %v608_v63 = vld [vmem:[#allocation5 + $0xb18] sm:$0xff] }
 0x10b   : > { %3562 = vmatpush1.bf16.msra.mxu0 %v4340_v5  ;;  %3648 = vmatpush1.bf16.msra.mxu1 %v4342_v6  ;;  %v503_v5 = vld [vmem:[#allocation5 + $0x7d0] sm:$0xff]  ;;  %v496_v6 = vld [vmem:[#allocation5 + $0x798] sm:$0xff] }
 0x10c   : > { %3563 = vmatprep.subr.bf16.mxu0 %v4357_v7  ;;  %3649 = vmatprep.subr.bf16.mxu1 %v4359_v8  ;;  %v504_v7 = vld [vmem:[#allocation5 + $0x7d8] sm:$0xff]  ;;  %v4468_v8 = vcombine.low %v479_v60, %v487_v61  ;;  %v4485_v11 = vcombine.high %v495_v4, %v503_v5  ;;  %v607_v61 = vld [vmem:[#allocation5 + $0xb10] sm:$0xff] }
 0x10d   : > { %v4487_v12 = vcombine.high %v496_v6, %v504_v7  ;;  %v4486_v20 = vcombine.low %v496_v6, %v504_v7  ;;  %v631_v6 = vld [vmem:[#allocation5 + $0xbd0] sm:$0xff]  ;;  %v624_v7 = vld [vmem:[#allocation5 + $0xb98] sm:$0xff] }
 0x10f   : > { %3564 = vmatpush1.bf16.msra.mxu0 %v4356_v14  ;;  %3650 = vmatpush1.bf16.msra.mxu1 %v4358_v15  ;;  %v519_v14 = vld [vmem:[#allocation5 + $0x850] sm:$0xff]  ;;  %v512_v15 = vld [vmem:[#allocation5 + $0x818] sm:$0xff] }
 0x110   : > { %3565 = vmatprep.subr.bf16.mxu0 %v4373_v16  ;;  %3651 = vmatprep.subr.bf16.mxu1 %v4375_v18  ;;  %v520_v16 = vld [vmem:[#allocation5 + $0x858] sm:$0xff]  ;;  %v4484_v18 = vcombine.low %v495_v4, %v503_v5  ;;  %v4501_v21 = vcombine.high %v511_v13, %v519_v14  ;;  %v623_v5 = vld [vmem:[#allocation5 + $0xb90] sm:$0xff] }
 0x111   : > { %v4503_v22 = vcombine.high %v512_v15, %v520_v16  ;;  %v4502_v28 = vcombine.low %v512_v15, %v520_v16  ;;  %v647_v15 = vld [vmem:[#allocation5 + $0xc50] sm:$0xff]  ;;  %v640_v16 = vld [vmem:[#allocation5 + $0xc18] sm:$0xff] }
 0x113   : > { %3566 = vmatpush1.bf16.msra.mxu0 %v4372_v24  ;;  %3652 = vmatpush1.bf16.msra.mxu1 %v4374_v25  ;;  %v535_v24 = vld [vmem:[#allocation5 + $0x8d0] sm:$0xff]  ;;  %v528_v25 = vld [vmem:[#allocation5 + $0x898] sm:$0xff] }
 0x114   : > { %3567 = vmatprep.subr.bf16.mxu0 %v4389_v26  ;;  %3653 = vmatprep.subr.bf16.mxu1 %v4391_v27  ;;  %v536_v26 = vld [vmem:[#allocation5 + $0x8d8] sm:$0xff]  ;;  %v4500_v27 = vcombine.low %v511_v13, %v519_v14  ;;  %v4517_v29 = vcombine.high %v527_v23, %v535_v24  ;;  %v639_v14 = vld [vmem:[#allocation5 + $0xc10] sm:$0xff] }
 0x115   : > { %v4519_v30 = vcombine.high %v528_v25, %v536_v26  ;;  %v4518_v36 = vcombine.low %v528_v25, %v536_v26  ;;  %v663_v25 = vld [vmem:[#allocation5 + $0xcd0] sm:$0xff]  ;;  %v656_v26 = vld [vmem:[#allocation5 + $0xc98] sm:$0xff] }
 0x117   : > { %3568 = vmatpush1.bf16.msra.mxu0 %v4388_v32  ;;  %3654 = vmatpush1.bf16.msra.mxu1 %v4390_v33  ;;  %v551_v32 = vld [vmem:[#allocation5 + $0x950] sm:$0xff]  ;;  %v544_v33 = vld [vmem:[#allocation5 + $0x918] sm:$0xff] }
 0x118   : > { %3569 = vmatprep.subr.bf16.mxu0 %v4405_v34  ;;  %3655 = vmatprep.subr.bf16.mxu1 %v4407_v35  ;;  %v552_v34 = vld [vmem:[#allocation5 + $0x958] sm:$0xff]  ;;  %v4516_v35 = vcombine.low %v527_v23, %v535_v24  ;;  %v4533_v37 = vcombine.high %v543_v31, %v551_v32  ;;  %v655_v24 = vld [vmem:[#allocation5 + $0xc90] sm:$0xff] }
 0x119   : > { %v4535_v38 = vcombine.high %v544_v33, %v552_v34 }
 0x11b   : > { %3570 = vmatpush1.bf16.msra.mxu0 %v4404_v40  ;;  %3656 = vmatpush1.bf16.msra.mxu1 %v4406_v41  ;;  %v567_v40 = vld [vmem:[#allocation5 + $0x9d0] sm:$0xff]  ;;  %v560_v41 = vld [vmem:[#allocation5 + $0x998] sm:$0xff] }
 0x11c   : > { %3571 = vmatprep.subr.bf16.mxu0 %v4421_v42  ;;  %3657 = vmatprep.subr.bf16.mxu1 %v4423_v43  ;;  %v568_v42 = vld [vmem:[#allocation5 + $0x9d8] sm:$0xff]  ;;  %v4532_v43 = vcombine.low %v543_v31, %v551_v32  ;;  %v4549_v44 = vcombine.high %v559_v39, %v567_v40  ;;  %v671_v32 = vld [vmem:[#allocation5 + $0xd10] sm:$0xff] }
 0x11d   : > { %v4551_v45 = vcombine.high %v560_v41, %v568_v42 }
 0x11f   : > { %3572 = vmatpush1.bf16.msra.mxu0 %v4420_v56  ;;  %3658 = vmatpush1.bf16.msra.mxu1 %v4422_v48  ;;  %v576_v56 = vld [vmem:[#allocation5 + $0xa18] sm:$0xff] }
 0x120   : > { %3573 = vmatprep.subr.bf16.mxu0 %v4437_v49  ;;  %3659 = vmatprep.subr.bf16.mxu1 %v4439_v50  ;;  %v584_v48 = vld [vmem:[#allocation5 + $0xa58] sm:$0xff]  ;;  %v4548_v49 = vcombine.low %v559_v39, %v567_v40  ;;  %v4550_v50 = vcombine.low %v560_v41, %v568_v42  ;;  %v687_v40 = vld [vmem:[#allocation5 + $0xd90] sm:$0xff] }
 0x121   : > { %v695_v41 = vld [vmem:[#allocation5 + $0xdd0] sm:$0xff]  ;;  %v688_v42 = vld [vmem:[#allocation5 + $0xd98] sm:$0xff] }
 0x123   : > { %3574 = vmatpush1.bf16.msra.mxu0 %v4436_v55  ;;  %3660 = vmatpush1.bf16.msra.mxu1 %v4438_v57  ;;  %v600_v55 = vld [vmem:[#allocation5 + $0xad8] sm:$0xff]  ;;  %v4564_v57 = vcombine.low %v575_v46, %v583_v47  ;;  %v703_v47 = vld [vmem:[#allocation5 + $0xe10] sm:$0xff] }
 0x124   : > { %3575 = vmatprep.subr.bf16.mxu0 %v4453_v58  ;;  %3661 = vmatprep.subr.bf16.mxu1 %v4455_v59  ;;  %v4566_v58 = vcombine.low %v576_v56, %v584_v48  ;;  %v4581_v59 = vcombine.high %v591_v52, %v599_v53  ;;  %v4583_v60 = vcombine.high %v592_v54, %v600_v55 }
 0x127   : > { %3576 = vmatpush1.bf16.msra.mxu0 %v4452_v0  ;;  %3662 = vmatpush1.bf16.msra.mxu1 %v4454_v1  ;;  %v616_v0 = vld [vmem:[#allocation5 + $0xb58] sm:$0xff]  ;;  %v4580_v1 = vcombine.low %v591_v52, %v599_v53  ;;  %v719_v53 = vld [vmem:[#allocation5 + $0xe90] sm:$0xff] }
 0x128   : > { %3577 = vmatprep.subr.bf16.mxu0 %v4469_v2  ;;  %3663 = vmatprep.subr.bf16.mxu1 %v4471_v3  ;;  %v4582_v2 = vcombine.low %v592_v54, %v600_v55  ;;  %v4597_v3 = vcombine.high %v607_v61, %v615_v62  ;;  %v4599_v4 = vcombine.high %v608_v63, %v616_v0  ;;  %v727_v54 = vld [vmem:[#allocation5 + $0xed0] sm:$0xff]  ;;  %v720_v55 = vld [vmem:[#allocation5 + $0xe98] sm:$0xff] }
 0x12b   : > { %3578 = vmatpush1.bf16.msra.mxu0 %v4468_v8  ;;  %3664 = vmatpush1.bf16.msra.mxu1 %v4470_v9  ;;  %v632_v8 = vld [vmem:[#allocation5 + $0xbd8] sm:$0xff]  ;;  %v4596_v9 = vcombine.low %v607_v61, %v615_v62  ;;  %v735_v62 = vld [vmem:[#allocation5 + $0xf10] sm:$0xff] }
 0x12c   : > { %3579 = vmatprep.subr.bf16.mxu0 %v4485_v11  ;;  %3665 = vmatprep.subr.bf16.mxu1 %v4487_v12  ;;  %v4598_v11 = vcombine.low %v608_v63, %v616_v0  ;;  %v4613_v12 = vcombine.high %v623_v5, %v631_v6  ;;  %v4615_v13 = vcombine.high %v624_v7, %v632_v8  ;;  %v743_v63 = vld [vmem:[#allocation5 + $0xf50] sm:$0xff]  ;;  %v736_v0 = vld [vmem:[#allocation5 + $0xf18] sm:$0xff] }
 0x12f   : > { %3580 = vmatpush1.bf16.msra.mxu0 %v4484_v18  ;;  %3666 = vmatpush1.bf16.msra.mxu1 %v4486_v20  ;;  %v648_v18 = vld [vmem:[#allocation5 + $0xc58] sm:$0xff]  ;;  %v4612_v20 = vcombine.low %v623_v5, %v631_v6  ;;  %v751_v6 = vld [vmem:[#allocation5 + $0xf90] sm:$0xff] }
 0x130   : > { %3592 = vmatprep.subr.bf16.mxu0 %v4501_v21  ;;  %3678 = vmatprep.subr.bf16.mxu1 %v4503_v22  ;;  %v4614_v21 = vcombine.low %v624_v7, %v632_v8  ;;  %v4629_v22 = vcombine.high %v639_v14, %v647_v15  ;;  %v4631_v23 = vcombine.high %v640_v16, %v648_v18  ;;  %v759_v7 = vld [vmem:[#allocation5 + $0xfd0] sm:$0xff]  ;;  %v752_v8 = vld [vmem:[#allocation5 + $0xf98] sm:$0xff] }
 0x132   : > { %3582 = vmatmul.mubr.bf16.vlgmr.msra.gmra.mrb[4].mxu0 %v5338_v10  ;;  %3668 = vmatmul.mubr.bf16.vlgmr.msra.gmra.mrb[4].mxu1 %v5338_v10  ;;  %v4534_v10 = vcombine.low %v544_v33, %v552_v34  ;;  %v679_v33 = vld [vmem:[#allocation5 + $0xd50] sm:$0xff]  ;;  %v672_v34 = vld [vmem:[#allocation5 + $0xd18] sm:$0xff] }
 0x133   : > { %3593 = vmatpush1.bf16.msra.mxu0 %v4500_v27  ;;  %3679 = vmatpush1.bf16.msra.mxu1 %v4502_v28  ;;  %v664_v27 = vld [vmem:[#allocation5 + $0xcd8] sm:$0xff]  ;;  %v4628_v28 = vcombine.low %v639_v14, %v647_v15  ;;  %v257_v15 = vld [vmem:[#allocation5 + $0x20] sm:$0xff] }
 0x134   : > { %3594 = vmatprep.subr.bf16.mxu0 %v4517_v29  ;;  %3680 = vmatprep.subr.bf16.mxu1 %v4519_v30  ;;  %v4630_v29 = vcombine.low %v640_v16, %v648_v18  ;;  %v4645_v30 = vcombine.high %v655_v24, %v663_v25  ;;  %v4647_v31 = vcombine.high %v656_v26, %v664_v27  ;;  %v265_v16 = vld [vmem:[#allocation5 + $0x60] sm:$0xff]  ;;  %v258_v18 = vld [vmem:[#allocation5 + $0x28] sm:$0xff] }
 0x135   : > { %3624 = vmatprep.mubr.bf16.mxu0 %v5341_v19  ;;  %3710 = vmatprep.mubr.bf16.mxu1 %v5341_v19  ;;  %v4567_v19 = vcombine.high %v576_v56, %v584_v48  ;;  %v711_v56 = vld [vmem:[#allocation5 + $0xe50] sm:$0xff]  ;;  %v704_v48 = vld [vmem:[#allocation5 + $0xe18] sm:$0xff] }
 0x137   : > { %3595 = vmatpush1.bf16.msra.mxu0 %v4516_v35  ;;  %3681 = vmatpush1.bf16.msra.mxu1 %v4518_v36  ;;  %v680_v35 = vld [vmem:[#allocation5 + $0xd58] sm:$0xff]  ;;  %v4644_v36 = vcombine.low %v655_v24, %v663_v25  ;;  %v273_v25 = vld [vmem:[#allocation5 + $0xa0] sm:$0xff] }
 0x138   : > { %3596 = vmatprep.subr.bf16.mxu0 %v4533_v37  ;;  %3682 = vmatprep.subr.bf16.mxu1 %v4535_v38  ;;  %v4646_v37 = vcombine.low %v656_v26, %v664_v27  ;;  %v4661_v38 = vcombine.high %v671_v32, %v679_v33  ;;  %v4663_v39 = vcombine.high %v672_v34, %v680_v35  ;;  %v281_v26 = vld [vmem:[#allocation5 + $0xe0] sm:$0xff]  ;;  %v274_v27 = vld [vmem:[#allocation5 + $0xa8] sm:$0xff] }
 0x13b   : > { %3597 = vmatpush1.bf16.msra.mxu0 %v4532_v43  ;;  %3683 = vmatpush1.bf16.msra.mxu1 %v4534_v10  ;;  %v696_v43 = vld [vmem:[#allocation5 + $0xdd8] sm:$0xff]  ;;  %v4660_v10 = vcombine.low %v671_v32, %v679_v33  ;;  %v289_v33 = vld [vmem:[#allocation5 + $0x120] sm:$0xff] }
 0x13c   : > { %3598 = vmatprep.subr.bf16.mxu0 %v4549_v44  ;;  %3684 = vmatprep.subr.bf16.mxu1 %v4551_v45  ;;  %v4662_v44 = vcombine.low %v672_v34, %v680_v35  ;;  %v4677_v45 = vcombine.high %v687_v40, %v695_v41  ;;  %v4679_v46 = vcombine.high %v688_v42, %v696_v43  ;;  %v297_v34 = vld [vmem:[#allocation5 + $0x160] sm:$0xff]  ;;  %v290_v35 = vld [vmem:[#allocation5 + $0x128] sm:$0xff] }
 0x13f   : > { %3599 = vmatpush1.bf16.msra.mxu0 %v4548_v49  ;;  %3685 = vmatpush1.bf16.msra.mxu1 %v4550_v50  ;;  %v712_v49 = vld [vmem:[#allocation5 + $0xe58] sm:$0xff]  ;;  %v4676_v50 = vcombine.low %v687_v40, %v695_v41  ;;  %v305_v41 = vld [vmem:[#allocation5 + $0x1a0] sm:$0xff] }
 0x140   : > { %3600 = vmatprep.subr.bf16.mxu0 %v4565_v51  ;;  %3686 = vmatprep.subr.bf16.mxu1 %v4567_v19  ;;  %v4678_v51 = vcombine.low %v688_v42, %v696_v43  ;;  %v4693_v19 = vcombine.high %v703_v47, %v711_v56  ;;  %v4695_v52 = vcombine.high %v704_v48, %v712_v49  ;;  %v313_v42 = vld [vmem:[#allocation5 + $0x1e0] sm:$0xff] }
 0x141   : > { %v5361_v43 = vld [vmem:[%s5322_s4 + $0x4] ss:$16 sps:$4 sm:$0xff]  }
 0x143   : > { %3601 = vmatpush1.bf16.msra.mxu0 %v4564_v57  ;;  %3687 = vmatpush1.bf16.msra.mxu1 %v4566_v58  ;;  %v728_v57 = vld [vmem:[#allocation5 + $0xed8] sm:$0xff]  ;;  %v4692_v58 = vcombine.low %v703_v47, %v711_v56  ;;  %v321_v56 = vld [vmem:[#allocation5 + $0x220] sm:$0xff] }
 0x144   : > { %3602 = vmatprep.subr.bf16.mxu0 %v4581_v59  ;;  %3688 = vmatprep.subr.bf16.mxu1 %v4583_v60  ;;  %v4694_v59 = vcombine.low %v704_v48, %v712_v49  ;;  %v4709_v60 = vcombine.high %v719_v53, %v727_v54  ;;  %v4711_v61 = vcombine.high %v720_v55, %v728_v57  ;;  %v329_v48 = vld [vmem:[#allocation5 + $0x260] sm:$0xff]  ;;  %v322_v49 = vld [vmem:[#allocation5 + $0x228] sm:$0xff] }
 0x147   : > { %3603 = vmatpush1.bf16.msra.mxu0 %v4580_v1  ;;  %3689 = vmatpush1.bf16.msra.mxu1 %v4582_v2  ;;  %v744_v1 = vld [vmem:[#allocation5 + $0xf58] sm:$0xff]  ;;  %v4708_v2 = vcombine.low %v719_v53, %v727_v54  ;;  %v337_v54 = vld [vmem:[#allocation5 + $0x2a0] sm:$0xff] }
 0x148   : > { %3604 = vmatprep.subr.bf16.mxu0 %v4597_v3  ;;  %3690 = vmatprep.subr.bf16.mxu1 %v4599_v4  ;;  %v4710_v3 = vcombine.low %v720_v55, %v728_v57  ;;  %v4725_v4 = vcombine.high %v735_v62, %v743_v63  ;;  %v4727_v5 = vcombine.high %v736_v0, %v744_v1  ;;  %v345_v55 = vld [vmem:[#allocation5 + $0x2e0] sm:$0xff]  ;;  %v338_v57 = vld [vmem:[#allocation5 + $0x2a8] sm:$0xff] }
 0x14b   : > { %3605 = vmatpush1.bf16.msra.mxu0 %v4596_v9  ;;  %3691 = vmatpush1.bf16.msra.mxu1 %v4598_v11  ;;  %v760_v9 = vld [vmem:[#allocation5 + $0xfd8] sm:$0xff]  ;;  %v4724_v11 = vcombine.low %v735_v62, %v743_v63  ;;  %v353_v63 = vld [vmem:[#allocation5 + $0x320] sm:$0xff] }
 0x14c   : > { %3606 = vmatprep.subr.bf16.mxu0 %v4613_v12  ;;  %3692 = vmatprep.subr.bf16.mxu1 %v4615_v13  ;;  %v4726_v12 = vcombine.low %v736_v0, %v744_v1  ;;  %v4741_v13 = vcombine.high %v751_v6, %v759_v7  ;;  %v4743_v14 = vcombine.high %v752_v8, %v760_v9  ;;  %v361_v0 = vld [vmem:[#allocation5 + $0x360] sm:$0xff]  ;;  %v354_v1 = vld [vmem:[#allocation5 + $0x328] sm:$0xff] }
 0x14f   : > { %3607 = vmatpush1.bf16.msra.mxu0 %v4612_v20  ;;  %3693 = vmatpush1.bf16.msra.mxu1 %v4614_v21  ;;  %v266_v20 = vld [vmem:[#allocation5 + $0x68] sm:$0xff]  ;;  %v4740_v21 = vcombine.low %v751_v6, %v759_v7  ;;  %v369_v7 = vld [vmem:[#allocation5 + $0x3a0] sm:$0xff] }
 0x150   : > { %3608 = vmatprep.subr.bf16.mxu0 %v4629_v22  ;;  %3694 = vmatprep.subr.bf16.mxu1 %v4631_v23  ;;  %v4742_v22 = vcombine.low %v752_v8, %v760_v9  ;;  %v4249_v23 = vcombine.high %v257_v15, %v265_v16  ;;  %v4251_v24 = vcombine.high %v258_v18, %v266_v20  ;;  %v377_v8 = vld [vmem:[#allocation5 + $0x3e0] sm:$0xff]  ;;  %v370_v9 = vld [vmem:[#allocation5 + $0x3a8] sm:$0xff] }
 0x153   : > { %3609 = vmatpush1.bf16.msra.mxu0 %v4628_v28  ;;  %3695 = vmatpush1.bf16.msra.mxu1 %v4630_v29  ;;  %v282_v28 = vld [vmem:[#allocation5 + $0xe8] sm:$0xff]  ;;  %v4248_v29 = vcombine.low %v257_v15, %v265_v16  ;;  %v385_v16 = vld [vmem:[#allocation5 + $0x420] sm:$0xff] }
 0x154   : > { %3610 = vmatprep.subr.bf16.mxu0 %v4645_v30  ;;  %3696 = vmatprep.subr.bf16.mxu1 %v4647_v31  ;;  %v4250_v30 = vcombine.low %v258_v18, %v266_v20  ;;  %v4265_v31 = vcombine.high %v273_v25, %v281_v26  ;;  %v4267_v32 = vcombine.high %v274_v27, %v282_v28  ;;  %v393_v18 = vld [vmem:[#allocation5 + $0x460] sm:$0xff]  ;;  %v386_v20 = vld [vmem:[#allocation5 + $0x428] sm:$0xff] }
 0x157   : > { %3611 = vmatpush1.bf16.msra.mxu0 %v4644_v36  ;;  %3697 = vmatpush1.bf16.msra.mxu1 %v4646_v37  ;;  %v298_v36 = vld [vmem:[#allocation5 + $0x168] sm:$0xff]  ;;  %v4264_v37 = vcombine.low %v273_v25, %v281_v26  ;;  %v401_v26 = vld [vmem:[#allocation5 + $0x4a0] sm:$0xff] }
 0x158   : > { %3612 = vmatprep.subr.bf16.mxu0 %v4661_v38  ;;  %3698 = vmatprep.subr.bf16.mxu1 %v4663_v39  ;;  %v4266_v38 = vcombine.low %v274_v27, %v282_v28  ;;  %v4281_v39 = vcombine.high %v289_v33, %v297_v34  ;;  %v4283_v40 = vcombine.high %v290_v35, %v298_v36  ;;  %v409_v27 = vld [vmem:[#allocation5 + $0x4e0] sm:$0xff]  ;;  %v402_v28 = vld [vmem:[#allocation5 + $0x4a8] sm:$0xff] }
 0x15b   : > { %3613 = vmatpush1.bf16.msra.mxu0 %v4660_v10  ;;  %3699 = vmatpush1.bf16.msra.mxu1 %v4662_v44  ;;  %v306_v10 = vld [vmem:[#allocation5 + $0x1a8] sm:$0xff] }
 0x15c   : > { %3614 = vmatprep.subr.bf16.mxu0 %v4677_v45  ;;  %3700 = vmatprep.subr.bf16.mxu1 %v4679_v46  ;;  %v314_v44 = vld [vmem:[#allocation5 + $0x1e8] sm:$0xff]  ;;  %v4282_v45 = vcombine.low %v290_v35, %v298_v36  ;;  %v4297_v46 = vcombine.high %v305_v41, %v313_v42  ;;  %v425_v35 = vld [vmem:[#allocation5 + $0x560] sm:$0xff] }
 0x15d   : > { %v4299_v47 = vcombine.high %v306_v10, %v314_v44  ;;  %v418_v36 = vld [vmem:[#allocation5 + $0x528] sm:$0xff] }
 0x15f   : > { %3615 = vmatpush1.bf16.msra.mxu0 %v4676_v50  ;;  %3701 = vmatpush1.bf16.msra.mxu1 %v4678_v51  ;;  %v330_v50 = vld [vmem:[#allocation5 + $0x268] sm:$0xff]  ;;  %v4296_v51 = vcombine.low %v305_v41, %v313_v42  ;;  %v433_v42 = vld [vmem:[#allocation5 + $0x5a0] sm:$0xff] }
 0x160   : > { %3616 = vmatprep.subr.bf16.mxu0 %v4693_v19  ;;  %3702 = vmatprep.subr.bf16.mxu1 %v4695_v52  ;;  %v4298_v19 = vcombine.low %v306_v10, %v314_v44  ;;  %v4313_v52 = vcombine.high %v321_v56, %v329_v48  ;;  %v4315_v53 = vcombine.high %v322_v49, %v330_v50  ;;  %v441_v10 = vld [vmem:[#allocation5 + $0x5e0] sm:$0xff]  ;;  %v434_v44 = vld [vmem:[#allocation5 + $0x5a8] sm:$0xff] }
 0x163   : > { %3617 = vmatpush1.bf16.msra.mxu0 %v4692_v58  ;;  %3703 = vmatpush1.bf16.msra.mxu1 %v4694_v59  ;;  %v346_v58 = vld [vmem:[#allocation5 + $0x2e8] sm:$0xff]  ;;  %v4312_v59 = vcombine.low %v321_v56, %v329_v48  ;;  %v449_v48 = vld [vmem:[#allocation5 + $0x620] sm:$0xff] }
 0x164   : > { %3618 = vmatprep.subr.bf16.mxu0 %v4709_v60  ;;  %3704 = vmatprep.subr.bf16.mxu1 %v4711_v61  ;;  %v4314_v60 = vcombine.low %v322_v49, %v330_v50  ;;  %v4329_v61 = vcombine.high %v337_v54, %v345_v55  ;;  %v4331_v62 = vcombine.high %v338_v57, %v346_v58  ;;  %v457_v49 = vld [vmem:[#allocation5 + $0x660] sm:$0xff]  ;;  %v450_v50 = vld [vmem:[#allocation5 + $0x628] sm:$0xff] }
 0x167   : > { %3619 = vmatpush1.bf16.msra.mxu0 %v4708_v2  ;;  %3705 = vmatpush1.bf16.msra.mxu1 %v4710_v3  ;;  %v362_v2 = vld [vmem:[#allocation5 + $0x368] sm:$0xff]  ;;  %v4328_v3 = vcombine.low %v337_v54, %v345_v55  ;;  %v465_v55 = vld [vmem:[#allocation5 + $0x6a0] sm:$0xff] }
 0x168   : > { %3620 = vmatprep.subr.bf16.mxu0 %v4725_v4  ;;  %3706 = vmatprep.subr.bf16.mxu1 %v4727_v5  ;;  %v4330_v4 = vcombine.low %v338_v57, %v346_v58  ;;  %v4345_v5 = vcombine.high %v353_v63, %v361_v0  ;;  %v4347_v6 = vcombine.high %v354_v1, %v362_v2  ;;  %v473_v57 = vld [vmem:[#allocation5 + $0x6e0] sm:$0xff]  ;;  %v466_v58 = vld [vmem:[#allocation5 + $0x6a8] sm:$0xff] }
 0x16b   : > { %3621 = vmatpush1.bf16.msra.mxu0 %v4724_v11  ;;  %3707 = vmatpush1.bf16.msra.mxu1 %v4726_v12  ;;  %v378_v11 = vld [vmem:[#allocation5 + $0x3e8] sm:$0xff]  ;;  %v4344_v12 = vcombine.low %v353_v63, %v361_v0  ;;  %v481_v0 = vld [vmem:[#allocation5 + $0x720] sm:$0xff] }
 0x16c   : > { %3622 = vmatprep.subr.bf16.mxu0 %v4741_v13  ;;  %3708 = vmatprep.subr.bf16.mxu1 %v4743_v14  ;;  %v4346_v13 = vcombine.low %v354_v1, %v362_v2  ;;  %v4361_v14 = vcombine.high %v369_v7, %v377_v8  ;;  %v4363_v15 = vcombine.high %v370_v9, %v378_v11  ;;  %v489_v1 = vld [vmem:[#allocation5 + $0x760] sm:$0xff]  ;;  %v482_v2 = vld [vmem:[#allocation5 + $0x728] sm:$0xff] }
 0x16f   : > { %3623 = vmatpush1.bf16.msra.mxu0 %v4740_v21  ;;  %3709 = vmatpush1.bf16.msra.mxu1 %v4742_v22  ;;  %v394_v21 = vld [vmem:[#allocation5 + $0x468] sm:$0xff]  ;;  %v4360_v22 = vcombine.low %v369_v7, %v377_v8  ;;  %v497_v8 = vld [vmem:[#allocation5 + $0x7a0] sm:$0xff] }
 0x170   : > { %3721 = vmatprep.subr.bf16.mxu0 %v4249_v23  ;;  %3807 = vmatprep.subr.bf16.mxu1 %v4251_v24  ;;  %v4362_v23 = vcombine.low %v370_v9, %v378_v11  ;;  %v4377_v24 = vcombine.high %v385_v16, %v393_v18  ;;  %v4379_v25 = vcombine.high %v386_v20, %v394_v21  ;;  %v505_v9 = vld [vmem:[#allocation5 + $0x7e0] sm:$0xff]  ;;  %v498_v11 = vld [vmem:[#allocation5 + $0x7a8] sm:$0xff] }
 0x172   : > { %3625 = vmatmul.mubr.bf16.vlgmr.msra.gmra.mrb[4].mxu0 %v5348_v17  ;;  %3711 = vmatmul.mubr.bf16.vlgmr.msra.gmra.mrb[4].mxu1 %v5348_v17  ;;  %v4280_v17 = vcombine.low %v289_v33, %v297_v34  ;;  %v417_v34 = vld [vmem:[#allocation5 + $0x520] sm:$0xff] }
 0x173   : > { %3722 = vmatpush1.bf16.msra.mxu0 %v4248_v29  ;;  %3808 = vmatpush1.bf16.msra.mxu1 %v4250_v30  ;;  %v410_v29 = vld [vmem:[#allocation5 + $0x4e8] sm:$0xff]  ;;  %v4376_v30 = vcombine.low %v385_v16, %v393_v18  ;;  %v513_v18 = vld [vmem:[#allocation5 + $0x820] sm:$0xff] }
 0x174   : > { %3723 = vmatprep.subr.bf16.mxu0 %v4265_v31  ;;  %3809 = vmatprep.subr.bf16.mxu1 %v4267_v32  ;;  %v4378_v31 = vcombine.low %v386_v20, %v394_v21  ;;  %v4393_v32 = vcombine.high %v401_v26, %v409_v27  ;;  %v4395_v33 = vcombine.high %v402_v28, %v410_v29  ;;  %v521_v20 = vld [vmem:[#allocation5 + $0x860] sm:$0xff]  ;;  %v514_v21 = vld [vmem:[#allocation5 + $0x828] sm:$0xff] }
 0x175   : > { %3753 = vmatprep.mubr.bf16.mxu0 %v5361_v43  ;;  %3839 = vmatprep.mubr.bf16.mxu1 %v5361_v43 }
 0x177   : > { %3724 = vmatpush1.bf16.msra.mxu0 %v4264_v37  ;;  %3810 = vmatpush1.bf16.msra.mxu1 %v4266_v38  ;;  %v426_v37 = vld [vmem:[#allocation5 + $0x568] sm:$0xff]  ;;  %v4392_v38 = vcombine.low %v401_v26, %v409_v27  ;;  %v529_v27 = vld [vmem:[#allocation5 + $0x8a0] sm:$0xff] }
 0x178   : > { %3725 = vmatprep.subr.bf16.mxu0 %v4281_v39  ;;  %3811 = vmatprep.subr.bf16.mxu1 %v4283_v40  ;;  %v4394_v39 = vcombine.low %v402_v28, %v410_v29  ;;  %v4409_v40 = vcombine.high %v417_v34, %v425_v35  ;;  %v4411_v41 = vcombine.high %v418_v36, %v426_v37  ;;  %v537_v28 = vld [vmem:[#allocation5 + $0x8e0] sm:$0xff]  ;;  %v530_v29 = vld [vmem:[#allocation5 + $0x8a8] sm:$0xff] }
 0x17b   : > { %3726 = vmatpush1.bf16.msra.mxu0 %v4280_v17  ;;  %3812 = vmatpush1.bf16.msra.mxu1 %v4282_v45  ;;  %v442_v17 = vld [vmem:[#allocation5 + $0x5e8] sm:$0xff]  ;;  %v4408_v45 = vcombine.low %v417_v34, %v425_v35  ;;  %v545_v35 = vld [vmem:[#allocation5 + $0x920] sm:$0xff] }
 0x17c   : > { %3727 = vmatprep.subr.bf16.mxu0 %v4297_v46  ;;  %3813 = vmatprep.subr.bf16.mxu1 %v4299_v47  ;;  %v4410_v46 = vcombine.low %v418_v36, %v426_v37  ;;  %v4425_v47 = vcombine.high %v433_v42, %v441_v10  ;;  %v4427_v56 = vcombine.high %v434_v44, %v442_v17  ;;  %v553_v36 = vld [vmem:[#allocation5 + $0x960] sm:$0xff] }
 0x17d   : > { %v5366_v37 = vld [vmem:[%s5322_s4] ss:$16 sps:$4 sm:$0xff]  }
 0x17f   : > { %3728 = vmatpush1.bf16.msra.mxu0 %v4296_v51  ;;  %3814 = vmatpush1.bf16.msra.mxu1 %v4298_v19  ;;  %v458_v51 = vld [vmem:[#allocation5 + $0x668] sm:$0xff]  ;;  %v4424_v19 = vcombine.low %v433_v42, %v441_v10  ;;  %v4537_v42 = vcombine.high %v545_v35, %v553_v36 }
 0x180   : > { %3729 = vmatprep.subr.bf16.mxu0 %v4313_v52  ;;  %3815 = vmatprep.subr.bf16.mxu1 %v4315_v53  ;;  %v4426_v52 = vcombine.low %v434_v44, %v442_v17  ;;  %v4441_v53 = vcombine.high %v449_v48, %v457_v49  ;;  %v4443_v54 = vcombine.high %v450_v50, %v458_v51  ;;  %v561_v44 = vld [vmem:[#allocation5 + $0x9a0] sm:$0xff] }
 0x181   : > { %v569_v17 = vld [vmem:[#allocation5 + $0x9e0] sm:$0xff] }
 0x183   : > { %3730 = vmatpush1.bf16.msra.mxu0 %v4312_v59  ;;  %3816 = vmatpush1.bf16.msra.mxu1 %v4314_v60  ;;  %v474_v59 = vld [vmem:[#allocation5 + $0x6e8] sm:$0xff]  ;;  %v4440_v60 = vcombine.low %v449_v48, %v457_v49  ;;  %v4553_v49 = vcombine.high %v561_v44, %v569_v17 }
 0x184   : > { %3731 = vmatprep.subr.bf16.mxu0 %v4329_v61  ;;  %3817 = vmatprep.subr.bf16.mxu1 %v4331_v62  ;;  %v4442_v61 = vcombine.low %v450_v50, %v458_v51  ;;  %v4457_v62 = vcombine.high %v465_v55, %v473_v57  ;;  %v4459_v63 = vcombine.high %v466_v58, %v474_v59  ;;  %v577_v51 = vld [vmem:[#allocation5 + $0xa20] sm:$0xff] }
 0x187   : > { %3732 = vmatpush1.bf16.msra.mxu0 %v4328_v3  ;;  %3818 = vmatpush1.bf16.msra.mxu1 %v4330_v4  ;;  %v490_v3 = vld [vmem:[#allocation5 + $0x768] sm:$0xff]  ;;  %v4456_v4 = vcombine.low %v465_v55, %v473_v57 }
 0x188   : > { %3733 = vmatprep.subr.bf16.mxu0 %v4345_v5  ;;  %3819 = vmatprep.subr.bf16.mxu1 %v4347_v6  ;;  %v4458_v5 = vcombine.low %v466_v58, %v474_v59  ;;  %v4473_v6 = vcombine.high %v481_v0, %v489_v1  ;;  %v4475_v7 = vcombine.high %v482_v2, %v490_v3  ;;  %v593_v59 = vld [vmem:[#allocation5 + $0xaa0] sm:$0xff] }
 0x18b   : > { %3734 = vmatpush1.bf16.msra.mxu0 %v4344_v12  ;;  %3820 = vmatpush1.bf16.msra.mxu1 %v4346_v13  ;;  %v506_v12 = vld [vmem:[#allocation5 + $0x7e8] sm:$0xff]  ;;  %v4472_v13 = vcombine.low %v481_v0, %v489_v1 }
 0x18c   : > { %3735 = vmatprep.subr.bf16.mxu0 %v4361_v14  ;;  %3821 = vmatprep.subr.bf16.mxu1 %v4363_v15  ;;  %v4474_v14 = vcombine.low %v482_v2, %v490_v3  ;;  %v4489_v15 = vcombine.high %v497_v8, %v505_v9  ;;  %v4491_v16 = vcombine.high %v498_v11, %v506_v12  ;;  %v609_v3 = vld [vmem:[#allocation5 + $0xb20] sm:$0xff] }
 0x18f   : > { %3736 = vmatpush1.bf16.msra.mxu0 %v4360_v22  ;;  %3822 = vmatpush1.bf16.msra.mxu1 %v4362_v23  ;;  %v522_v22 = vld [vmem:[#allocation5 + $0x868] sm:$0xff]  ;;  %v4488_v23 = vcombine.low %v497_v8, %v505_v9  ;;  %v767_v8 = vld [vmem:[#allocation7 + $0x10] sm:$0xff] }
 0x190   : > { %3737 = vmatprep.subr.bf16.mxu0 %v4377_v24  ;;  %3823 = vmatprep.subr.bf16.mxu1 %v4379_v25  ;;  %v4490_v24 = vcombine.low %v498_v11, %v506_v12  ;;  %v4505_v25 = vcombine.high %v513_v18, %v521_v20  ;;  %v4507_v26 = vcombine.high %v514_v21, %v522_v22  ;;  %v766_v11 = vld [vmem:[#allocation7 + $0x8] sm:$0xff]  ;;  %v768_v12 = vld [vmem:[#allocation7 + $0x18] sm:$0xff] }
 0x193   : > { %3738 = vmatpush1.bf16.msra.mxu0 %v4376_v30  ;;  %3824 = vmatpush1.bf16.msra.mxu1 %v4378_v31  ;;  %v538_v30 = vld [vmem:[#allocation5 + $0x8e8] sm:$0xff]  ;;  %v4504_v31 = vcombine.low %v513_v18, %v521_v20  ;;  %v783_v18 = vld [vmem:[#allocation7 + $0x90] sm:$0xff] }
 0x194   : > { %3739 = vmatprep.subr.bf16.mxu0 %v4393_v32  ;;  %3825 = vmatprep.subr.bf16.mxu1 %v4395_v33  ;;  %v4506_v32 = vcombine.low %v514_v21, %v522_v22  ;;  %v4521_v33 = vcombine.high %v529_v27, %v537_v28  ;;  %v4523_v34 = vcombine.high %v530_v29, %v538_v30  ;;  %v625_v21 = vld [vmem:[#allocation5 + $0xba0] sm:$0xff] }
 0x195   : > { %v633_v22 = vld [vmem:[#allocation5 + $0xbe0] sm:$0xff] }
 0x197   : > { %3740 = vmatpush1.bf16.msra.mxu0 %v4392_v38  ;;  %3826 = vmatpush1.bf16.msra.mxu1 %v4394_v39  ;;  %v546_v38 = vld [vmem:[#allocation5 + $0x928] sm:$0xff] }
 0x198   : > { %3741 = vmatprep.subr.bf16.mxu0 %v4409_v40  ;;  %3827 = vmatprep.subr.bf16.mxu1 %v4411_v41  ;;  %v554_v39 = vld [vmem:[#allocation5 + $0x968] sm:$0xff]  ;;  %v4520_v40 = vcombine.low %v529_v27, %v537_v28  ;;  %v4522_v41 = vcombine.low %v530_v29, %v538_v30 }
 0x199   : > { %v4539_v10 = vcombine.high %v546_v38, %v554_v39  ;;  %v4538_v48 = vcombine.low %v546_v38, %v554_v39  ;;  %v626_v27 = vld [vmem:[#allocation5 + $0xba8] sm:$0xff] }
 0x19a   : > { %v634_v28 = vld [vmem:[#allocation5 + $0xbe8] sm:$0xff] }
 0x19b   : > { %3742 = vmatpush1.bf16.msra.mxu0 %v4408_v45  ;;  %3828 = vmatpush1.bf16.msra.mxu1 %v4410_v46  ;;  %v5371_v45 = vld [vmem:[%s5322_s4 + $0xc] ss:$16 sps:$4 sm:$0xff]  }
 0x19c   : > { %3743 = vmatprep.subr.bf16.mxu0 %v4425_v47  ;;  %3829 = vmatprep.subr.bf16.mxu1 %v4427_v56  ;;  %v562_v46 = vld [vmem:[#allocation5 + $0x9a8] sm:$0xff]  ;;  %v4536_v56 = vcombine.low %v545_v35, %v553_v36 }
 0x19d   : > { %v570_v47 = vld [vmem:[#allocation5 + $0x9e8] sm:$0xff] }
 0x19e   : > { %v4555_v50 = vcombine.high %v562_v46, %v570_v47  ;;  %v4554_v55 = vcombine.low %v562_v46, %v570_v47  ;;  %v641_v46 = vld [vmem:[#allocation5 + $0xc20] sm:$0xff] }
 0x19f   : > { %3744 = vmatpush1.bf16.msra.mxu0 %v4424_v19  ;;  %3830 = vmatpush1.bf16.msra.mxu1 %v4426_v52  ;;  %v585_v19 = vld [vmem:[#allocation5 + $0xa60] sm:$0xff]  ;;  %v578_v52 = vld [vmem:[#allocation5 + $0xa28] sm:$0xff] }
 0x1a0   : > { %3745 = vmatprep.subr.bf16.mxu0 %v4441_v53  ;;  %3831 = vmatprep.subr.bf16.mxu1 %v4443_v54  ;;  %v586_v53 = vld [vmem:[#allocation5 + $0xa68] sm:$0xff]  ;;  %v4552_v54 = vcombine.low %v561_v44, %v569_v17  ;;  %v4569_v57 = vcombine.high %v577_v51, %v585_v19  ;;  %v4619_v17 = vcombine.high %v626_v27, %v634_v28  ;;  %v649_v47 = vld [vmem:[#allocation5 + $0xc60] sm:$0xff] }
 0x1a1   : > { %v4571_v58 = vcombine.high %v578_v52, %v586_v53  ;;  %v4570_v0 = vcombine.low %v578_v52, %v586_v53  ;;  %v657_v53 = vld [vmem:[#allocation5 + $0xca0] sm:$0xff] }
 0x1a3   : > { %3746 = vmatpush1.bf16.msra.mxu0 %v4440_v60  ;;  %3832 = vmatpush1.bf16.msra.mxu1 %v4442_v61  ;;  %v601_v60 = vld [vmem:[#allocation5 + $0xae0] sm:$0xff]  ;;  %v594_v61 = vld [vmem:[#allocation5 + $0xaa8] sm:$0xff] }
 0x1a4   : > { %3747 = vmatprep.subr.bf16.mxu0 %v4457_v62  ;;  %3833 = vmatprep.subr.bf16.mxu1 %v4459_v63  ;;  %v602_v62 = vld [vmem:[#allocation5 + $0xae8] sm:$0xff]  ;;  %v4568_v63 = vcombine.low %v577_v51, %v585_v19  ;;  %v4585_v1 = vcombine.high %v593_v59, %v601_v60  ;;  %v4584_v9 = vcombine.low %v593_v59, %v601_v60 }
 0x1a5   : > { %v4587_v2 = vcombine.high %v594_v61, %v602_v62  ;;  %v4618_v51 = vcombine.low %v626_v27, %v634_v28  ;;  %v4633_v19 = vcombine.high %v641_v46, %v649_v47  ;;  %v722_v27 = vld [vmem:[#allocation5 + $0xea8] sm:$0xff] }
 0x1a6   : > { %v730_v28 = vld [vmem:[#allocation5 + $0xee8] sm:$0xff] }
 0x1a7   : > { %3748 = vmatpush1.bf16.msra.mxu0 %v4456_v4  ;;  %3834 = vmatpush1.bf16.msra.mxu1 %v4458_v5  ;;  %v617_v4 = vld [vmem:[#allocation5 + $0xb60] sm:$0xff]  ;;  %v610_v5 = vld [vmem:[#allocation5 + $0xb28] sm:$0xff] }
 0x1a8   : > { %3749 = vmatprep.subr.bf16.mxu0 %v4473_v6  ;;  %3835 = vmatprep.subr.bf16.mxu1 %v4475_v7  ;;  %v618_v6 = vld [vmem:[#allocation5 + $0xb68] sm:$0xff]  ;;  %v765_v7 = vld [vmem:[#allocation7] sm:$0xff] }
 0x1a9   : > { %v4603_v20 = vcombine.high %v610_v5, %v618_v6  ;;  %v4602_v35 = vcombine.low %v610_v5, %v618_v6  ;;  %v689_v6 = vld [vmem:[#allocation5 + $0xda0] sm:$0xff] }
 0x1ab   : > { %3750 = vmatpush1.bf16.msra.mxu0 %v4472_v13  ;;  %3836 = vmatpush1.bf16.msra.mxu1 %v4474_v14  ;;  %v4586_v13 = vcombine.low %v594_v61, %v602_v62  ;;  %v781_v14 = vld [vmem:[#allocation7 + $0x80] sm:$0xff] }
 0x1ac   : > { %3751 = vmatprep.subr.bf16.mxu0 %v4489_v15  ;;  %3837 = vmatprep.subr.bf16.mxu1 %v4491_v16  ;;  %v4601_v15 = vcombine.high %v609_v3, %v617_v4  ;;  %v673_v62 = vld [vmem:[#allocation5 + $0xd20] sm:$0xff] }
 0x1af   : > { %3752 = vmatpush1.bf16.msra.mxu0 %v4488_v23  ;;  %3838 = vmatpush1.bf16.msra.mxu1 %v4490_v24 }
 0x1b0   : > { %3764 = vmatprep.subr.bf16.mxu0 %v4505_v25  ;;  %3850 = vmatprep.subr.bf16.mxu1 %v4507_v26  ;;  %v782_v26 = vld [vmem:[#allocation7 + $0x88] sm:$0xff] }
 0x1b2   : > { %3754 = vmatmul.mubr.bf16.vlgmr.msra.gmra.mrb[8].mxu0 %v5366_v37  ;;  %3840 = vmatmul.mubr.bf16.vlgmr.msra.gmra.mrb[8].mxu1 %v5366_v37 }
 0x1b3   : > { %3765 = vmatpush1.bf16.msra.mxu0 %v4504_v31  ;;  %3851 = vmatpush1.bf16.msra.mxu1 %v4506_v32 }
 0x1b4   : > { %3766 = vmatprep.subr.bf16.mxu0 %v4521_v33  ;;  %3852 = vmatprep.subr.bf16.mxu1 %v4523_v34  ;;  %v784_v33 = vld [vmem:[#allocation7 + $0x98] sm:$0xff]  ;;  %v4600_v34 = vcombine.low %v609_v3, %v617_v4 }
 0x1b5   : > { %3796 = vmatprep.mubr.bf16.mxu0 %v5371_v45  ;;  %3882 = vmatprep.mubr.bf16.mxu1 %v5371_v45 }
 0x1b7   : > { %3767 = vmatpush1.bf16.msra.mxu0 %v4520_v40  ;;  %3853 = vmatpush1.bf16.msra.mxu1 %v4522_v41  ;;  %v4617_v41 = vcombine.high %v625_v21, %v633_v22 }
 0x1b8   : > { %3768 = vmatprep.subr.bf16.mxu0 %v4537_v42  ;;  %3854 = vmatprep.subr.bf16.mxu1 %v4539_v10 }
 0x1bb   : > { %3769 = vmatpush1.bf16.msra.mxu0 %v4536_v56  ;;  %3855 = vmatpush1.bf16.msra.mxu1 %v4538_v48  ;;  %v642_v48 = vld [vmem:[#allocation5 + $0xc28] sm:$0xff] }
 0x1bc   : > { %3770 = vmatprep.subr.bf16.mxu0 %v4553_v49  ;;  %3856 = vmatprep.subr.bf16.mxu1 %v4555_v50  ;;  %v650_v49 = vld [vmem:[#allocation5 + $0xc68] sm:$0xff]  ;;  %v4616_v50 = vcombine.low %v625_v21, %v633_v22 }
 0x1bd   : > { %v4635_v52 = vcombine.high %v642_v48, %v650_v49  ;;  %v4634_v59 = vcombine.low %v642_v48, %v650_v49  ;;  %v259_v49 = vld [vmem:[#allocation5 + $0x30] sm:$0xff] }
 0x1bf   : > { %3771 = vmatpush1.bf16.msra.mxu0 %v4552_v54  ;;  %3857 = vmatpush1.bf16.msra.mxu1 %v4554_v55  ;;  %v665_v54 = vld [vmem:[#allocation5 + $0xce0] sm:$0xff]  ;;  %v658_v55 = vld [vmem:[#allocation5 + $0xca8] sm:$0xff] }
 0x1c0   : > { %3772 = vmatprep.subr.bf16.mxu0 %v4569_v57  ;;  %3858 = vmatprep.subr.bf16.mxu1 %v4571_v58  ;;  %v666_v57 = vld [vmem:[#allocation5 + $0xce8] sm:$0xff]  ;;  %v4632_v58 = vcombine.low %v641_v46, %v649_v47  ;;  %v4649_v60 = vcombine.high %v657_v53, %v665_v54 }
 0x1c1   : > { %v4651_v61 = vcombine.high %v658_v55, %v666_v57  ;;  %v4650_v3 = vcombine.low %v658_v55, %v666_v57  ;;  %v275_v57 = vld [vmem:[#allocation5 + $0xb0] sm:$0xff] }
 0x1c3   : > { %3773 = vmatpush1.bf16.msra.mxu0 %v4568_v63  ;;  %3859 = vmatpush1.bf16.msra.mxu1 %v4570_v0  ;;  %v681_v63 = vld [vmem:[#allocation5 + $0xd60] sm:$0xff]  ;;  %v674_v0 = vld [vmem:[#allocation5 + $0xd28] sm:$0xff] }
 0x1c4   : > { %3774 = vmatprep.subr.bf16.mxu0 %v4585_v1  ;;  %3860 = vmatprep.subr.bf16.mxu1 %v4587_v2  ;;  %v682_v1 = vld [vmem:[#allocation5 + $0xd68] sm:$0xff]  ;;  %v4648_v2 = vcombine.low %v657_v53, %v665_v54  ;;  %v4665_v4 = vcombine.high %v673_v62, %v681_v63 }
 0x1c5   : > { %v3454_v16 = vpop.f32.mrb[0].mxu0  ;;  %v3540_v24 = vpop.f32.mrb[0].mxu1  ;;  %v4667_v5 = vcombine.high %v674_v0, %v682_v1 }
 0x1c6   : > { %v4759_v23 = vadd.f32 %v3454_v16, %v765_v7  ;;  %v3456_v25 = vpop.f32.mrb[1].mxu0  ;;  %v4763_v29 = vadd.f32 %v3540_v24, %v767_v8  ;;  %v3542_v31 = vpop.f32.mrb[1].mxu1  ;;  %v697_v7 = vld [vmem:[#allocation5 + $0xde0] sm:$0xff]  ;;  %v690_v8 = vld [vmem:[#allocation5 + $0xda8] sm:$0xff] }
 0x1c7   : > { %v4760_v30 = vadd.f32 %v3456_v25, %v766_v11  ;;  %v3458_v32 = vpop.f32.mrb[2].mxu0  ;;  %3775 = vmatpush1.bf16.msra.mxu0 %v4584_v9  ;;  %v4764_v36 = vadd.f32 %v3542_v31, %v768_v12  ;;  %v3544_v39 = vpop.f32.mrb[2].mxu1  ;;  %3861 = vmatpush1.bf16.msra.mxu1 %v4586_v13  ;;  %v698_v9 = vld [vmem:[#allocation5 + $0xde8] sm:$0xff]  ;;  %v4664_v11 = vcombine.low %v673_v62, %v681_v63  ;;  %v713_v16 = vld [vmem:[#allocation5 + $0xe60] sm:$0xff] }
 0x1c8   : > { %4065 = vst [vmem:[%s5378_s22] sm:$0xff] %v4759_v23  ;;  %v4761_v38 = vadd.f32 %v3458_v32, %v781_v14  ;;  %v3460_v40 = vpop.f32.mrb[3].mxu0  ;;  %3776 = vmatprep.subr.bf16.mxu0 %v4601_v15  ;;  %4067 = vst [vmem:[%s5378_s22 + $0x10] sm:$0xff] %v4763_v29  ;;  %v4765_v42 = vadd.f32 %v3544_v39, %v783_v18  ;;  %v3546_v44 = vpop.f32.mrb[3].mxu1  ;;  %3862 = vmatprep.subr.bf16.mxu1 %v4603_v20  ;;  %v705_v15 = vld [vmem:[#allocation5 + $0xe20] sm:$0xff]  ;;  %v706_v18 = vld [vmem:[#allocation5 + $0xe28] sm:$0xff] }
 0x1c9   : > { %4066 = vst [vmem:[%s5378_s22 + $0x8] sm:$0xff] %v4760_v30  ;;  %v4762_v10 = vadd.f32 %v3460_v40, %v782_v26  ;;  %4068 = vst [vmem:[%s5378_s22 + $0x18] sm:$0xff] %v4764_v36  ;;  %v4766_v56 = vadd.f32 %v3546_v44, %v784_v33  ;;  %v4666_v12 = vcombine.low %v674_v0, %v682_v1  ;;  %v714_v20 = vld [vmem:[#allocation5 + $0xe68] sm:$0xff]  ;;  %v721_v25 = vld [vmem:[#allocation5 + $0xea0] sm:$0xff] }
 0x1ca   : > { %4081 = vst [vmem:[%s5378_s22 + $0x80] sm:$0xff] %v4761_v38  ;;  %4083 = vst [vmem:[%s5378_s22 + $0x90] sm:$0xff] %v4765_v42  ;;  %v4681_v13 = vcombine.high %v689_v6, %v697_v7  ;;  %v4683_v14 = vcombine.high %v690_v8, %v698_v9  ;;  %v4680_v21 = vcombine.low %v689_v6, %v697_v7  ;;  %v729_v26 = vld [vmem:[#allocation5 + $0xee0] sm:$0xff]  ;;  %v746_v36 = vld [vmem:[#allocation5 + $0xf68] sm:$0xff] }
 0x1cb   : > { %4082 = vst [vmem:[%s5378_s22 + $0x88] sm:$0xff] %v4762_v10  ;;  %3777 = vmatpush1.bf16.msra.mxu0 %v4600_v34  ;;  %4084 = vst [vmem:[%s5378_s22 + $0x98] sm:$0xff] %v4766_v56  ;;  %3863 = vmatpush1.bf16.msra.mxu1 %v4602_v35  ;;  %v4682_v22 = vcombine.low %v690_v8, %v698_v9  ;;  %v4697_v23 = vcombine.high %v705_v15, %v713_v16  ;;  %v737_v33 = vld [vmem:[#allocation5 + $0xf20] sm:$0xff]  ;;  %v738_v35 = vld [vmem:[#allocation5 + $0xf28] sm:$0xff] }
 0x1cc   : > { %3778 = vmatprep.subr.bf16.mxu0 %v4617_v41  ;;  %3864 = vmatprep.subr.bf16.mxu1 %v4619_v17  ;;  %v4699_v24 = vcombine.high %v706_v18, %v714_v20  ;;  %v4696_v29 = vcombine.low %v705_v15, %v713_v16  ;;  %v4698_v30 = vcombine.low %v706_v18, %v714_v20  ;;  %v745_v34 = vld [vmem:[#allocation5 + $0xf60] sm:$0xff]  ;;  %v754_v44 = vld [vmem:[#allocation5 + $0xfa8] sm:$0xff]  ;;  %v291_v1 = vld [vmem:[#allocation5 + $0x130] sm:$0xff] }
 0x1cd   : > { %v4713_v31 = vcombine.high %v721_v25, %v729_v26  ;;  %v4715_v32 = vcombine.high %v722_v27, %v730_v28  ;;  %v4712_v38 = vcombine.low %v721_v25, %v729_v26  ;;  %v4714_v39 = vcombine.low %v722_v27, %v730_v28  ;;  %v753_v42 = vld [vmem:[#allocation5 + $0xfa0] sm:$0xff]  ;;  %v762_v17 = vld [vmem:[#allocation5 + $0xfe8] sm:$0xff]  ;;  %v339_v28 = vld [vmem:[#allocation5 + $0x2b0] sm:$0xff] }
 0x1ce   : > { %v4729_v40 = vcombine.high %v737_v33, %v745_v34  ;;  %v4731_v41 = vcombine.high %v738_v35, %v746_v36  ;;  %v761_v10 = vld [vmem:[#allocation5 + $0xfe0] sm:$0xff]  ;;  %v4728_v46 = vcombine.low %v737_v33, %v745_v34  ;;  %v4730_v47 = vcombine.low %v738_v35, %v746_v36  ;;  %v355_v36 = vld [vmem:[#allocation5 + $0x330] sm:$0xff] }
 0x1cf   : > { %3779 = vmatpush1.bf16.msra.mxu0 %v4616_v50  ;;  %3865 = vmatpush1.bf16.msra.mxu1 %v4618_v51  ;;  %v4745_v56 = vcombine.high %v753_v42, %v761_v10  ;;  %v4747_v48 = vcombine.high %v754_v44, %v762_v17  ;;  %v267_v50 = vld [vmem:[#allocation5 + $0x70] sm:$0xff]  ;;  %v260_v51 = vld [vmem:[#allocation5 + $0x38] sm:$0xff]  ;;  %v4746_v53 = vcombine.low %v754_v44, %v762_v17 }
 0x1d0   : > { %3780 = vmatprep.subr.bf16.mxu0 %v4633_v19  ;;  %3866 = vmatprep.subr.bf16.mxu1 %v4635_v52  ;;  %v268_v19 = vld [vmem:[#allocation5 + $0x78] sm:$0xff]  ;;  %v4744_v52 = vcombine.low %v753_v42, %v761_v10  ;;  %v4253_v54 = vcombine.high %v259_v49, %v267_v50  ;;  %v371_v17 = vld [vmem:[#allocation5 + $0x3b0] sm:$0xff] }
 0x1d1   : > { %v4255_v55 = vcombine.high %v260_v51, %v268_v19  ;;  %v4254_v62 = vcombine.low %v260_v51, %v268_v19  ;;  %v387_v19 = vld [vmem:[#allocation5 + $0x430] sm:$0xff] }
 0x1d3   : > { %3781 = vmatpush1.bf16.msra.mxu0 %v4632_v58  ;;  %3867 = vmatpush1.bf16.msra.mxu1 %v4634_v59  ;;  %v283_v58 = vld [vmem:[#allocation5 + $0xf0] sm:$0xff]  ;;  %v276_v59 = vld [vmem:[#allocation5 + $0xb8] sm:$0xff] }
 0x1d4   : > { %3782 = vmatprep.subr.bf16.mxu0 %v4649_v60  ;;  %3868 = vmatprep.subr.bf16.mxu1 %v4651_v61  ;;  %v284_v60 = vld [vmem:[#allocation5 + $0xf8] sm:$0xff]  ;;  %v4252_v61 = vcombine.low %v259_v49, %v267_v50  ;;  %v4269_v63 = vcombine.high %v275_v57, %v283_v58  ;;  %v4268_v6 = vcombine.low %v275_v57, %v283_v58 }
 0x1d5   : > { %v4271_v0 = vcombine.high %v276_v59, %v284_v60  ;;  %v4270_v7 = vcombine.low %v276_v59, %v284_v60  ;;  %v403_v60 = vld [vmem:[#allocation5 + $0x4b0] sm:$0xff] }
 0x1d7   : > { %3783 = vmatpush1.bf16.msra.mxu0 %v4648_v2  ;;  %3869 = vmatpush1.bf16.msra.mxu1 %v4650_v3  ;;  %v299_v2 = vld [vmem:[#allocation5 + $0x170] sm:$0xff]  ;;  %v5389_v3 = vld [vmem:[%s5322_s4 + $0x8] ss:$16 sps:$4 sm:$0xff]  }
 0x1d8   : > { %3784 = vmatprep.subr.bf16.mxu0 %v4665_v4  ;;  %3870 = vmatprep.subr.bf16.mxu1 %v4667_v5  ;;  %v292_v4 = vld [vmem:[#allocation5 + $0x138] sm:$0xff]  ;;  %v4285_v8 = vcombine.high %v291_v1, %v299_v2  ;;  %v4284_v15 = vcombine.low %v291_v1, %v299_v2 }
 0x1d9   : > { %v300_v5 = vld [vmem:[#allocation5 + $0x178] sm:$0xff] }
 0x1da   : > { %v4287_v9 = vcombine.high %v292_v4, %v300_v5  ;;  %v4286_v16 = vcombine.low %v292_v4, %v300_v5  ;;  %v419_v5 = vld [vmem:[#allocation5 + $0x530] sm:$0xff] }
 0x1db   : > { %3785 = vmatpush1.bf16.msra.mxu0 %v4664_v11  ;;  %3871 = vmatpush1.bf16.msra.mxu1 %v4666_v12  ;;  %v307_v11 = vld [vmem:[#allocation5 + $0x1b0] sm:$0xff] }
 0x1dc   : > { %3786 = vmatprep.subr.bf16.mxu0 %v4681_v13  ;;  %3872 = vmatprep.subr.bf16.mxu1 %v4683_v14  ;;  %v315_v12 = vld [vmem:[#allocation5 + $0x1f0] sm:$0xff]  ;;  %v308_v13 = vld [vmem:[#allocation5 + $0x1b8] sm:$0xff] }
 0x1dd   : > { %v316_v14 = vld [vmem:[#allocation5 + $0x1f8] sm:$0xff]  ;;  %v4301_v18 = vcombine.high %v307_v11, %v315_v12  ;;  %v4300_v25 = vcombine.low %v307_v11, %v315_v12 }
 0x1de   : > { %v4303_v20 = vcombine.high %v308_v13, %v316_v14  ;;  %v4302_v26 = vcombine.low %v308_v13, %v316_v14  ;;  %v435_v14 = vld [vmem:[#allocation5 + $0x5b0] sm:$0xff] }
 0x1df   : > { %3787 = vmatpush1.bf16.msra.mxu0 %v4680_v21  ;;  %3873 = vmatpush1.bf16.msra.mxu1 %v4682_v22  ;;  %v323_v21 = vld [vmem:[#allocation5 + $0x230] sm:$0xff] }
 0x1e0   : > { %3788 = vmatprep.subr.bf16.mxu0 %v4697_v23  ;;  %3874 = vmatprep.subr.bf16.mxu1 %v4699_v24  ;;  %v331_v22 = vld [vmem:[#allocation5 + $0x270] sm:$0xff]  ;;  %v324_v23 = vld [vmem:[#allocation5 + $0x238] sm:$0xff] }
 0x1e1   : > { %v332_v24 = vld [vmem:[#allocation5 + $0x278] sm:$0xff]  ;;  %v4317_v27 = vcombine.high %v323_v21, %v331_v22 }
 0x1e2   : > { %v4318_v33 = vcombine.low %v324_v23, %v332_v24 }
 0x1e3   : > { %3789 = vmatpush1.bf16.msra.mxu0 %v4696_v29  ;;  %3875 = vmatpush1.bf16.msra.mxu1 %v4698_v30  ;;  %v347_v29 = vld [vmem:[#allocation5 + $0x2f0] sm:$0xff]  ;;  %v340_v30 = vld [vmem:[#allocation5 + $0x2b8] sm:$0xff] }
 0x1e4   : > { %3790 = vmatprep.subr.bf16.mxu0 %v4713_v31  ;;  %3876 = vmatprep.subr.bf16.mxu1 %v4715_v32  ;;  %v348_v31 = vld [vmem:[#allocation5 + $0x2f8] sm:$0xff]  ;;  %v4316_v32 = vcombine.low %v323_v21, %v331_v22  ;;  %v4333_v34 = vcombine.high %v339_v28, %v347_v29 }
 0x1e5   : > { %v4335_v35 = vcombine.high %v340_v30, %v348_v31  ;;  %v4334_v42 = vcombine.low %v340_v30, %v348_v31  ;;  %v467_v31 = vld [vmem:[#allocation5 + $0x6b0] sm:$0xff] }
 0x1e7   : > { %3791 = vmatpush1.bf16.msra.mxu0 %v4712_v38  ;;  %3877 = vmatpush1.bf16.msra.mxu1 %v4714_v39  ;;  %v363_v38 = vld [vmem:[#allocation5 + $0x370] sm:$0xff]  ;;  %v356_v39 = vld [vmem:[#allocation5 + $0x338] sm:$0xff] }
 0x1e8   : > { %3792 = vmatprep.subr.bf16.mxu0 %v4729_v40  ;;  %3878 = vmatprep.subr.bf16.mxu1 %v4731_v41  ;;  %v364_v40 = vld [vmem:[#allocation5 + $0x378] sm:$0xff]  ;;  %v4332_v41 = vcombine.low %v339_v28, %v347_v29  ;;  %v4349_v10 = vcombine.high %v355_v36, %v363_v38 }
 0x1e9   : > { %v4351_v44 = vcombine.high %v356_v39, %v364_v40  ;;  %v4350_v49 = vcombine.low %v356_v39, %v364_v40  ;;  %v483_v40 = vld [vmem:[#allocation5 + $0x730] sm:$0xff] }
 0x1eb   : > { %3793 = vmatpush1.bf16.msra.mxu0 %v4728_v46  ;;  %3879 = vmatpush1.bf16.msra.mxu1 %v4730_v47  ;;  %v379_v46 = vld [vmem:[#allocation5 + $0x3f0] sm:$0xff]  ;;  %v372_v47 = vld [vmem:[#allocation5 + $0x3b8] sm:$0xff] }
 0x1ec   : > { %3794 = vmatprep.subr.bf16.mxu0 %v4745_v56  ;;  %3880 = vmatprep.subr.bf16.mxu1 %v4747_v48  ;;  %v380_v56 = vld [vmem:[#allocation5 + $0x3f8] sm:$0xff]  ;;  %v4348_v48 = vcombine.low %v355_v36, %v363_v38  ;;  %v4365_v50 = vcombine.high %v371_v17, %v379_v46 }
 0x1ed   : > { %v4367_v51 = vcombine.high %v372_v47, %v380_v56  ;;  %v4366_v57 = vcombine.low %v372_v47, %v380_v56  ;;  %v499_v56 = vld [vmem:[#allocation5 + $0x7b0] sm:$0xff] }
 0x1ef   : > { %3795 = vmatpush1.bf16.msra.mxu0 %v4744_v52  ;;  %3881 = vmatpush1.bf16.msra.mxu1 %v4746_v53  ;;  %v395_v52 = vld [vmem:[#allocation5 + $0x470] sm:$0xff]  ;;  %v388_v53 = vld [vmem:[#allocation5 + $0x438] sm:$0xff] }
 0x1f0   : > { %3893 = vmatprep.subr.bf16.mxu0 %v4253_v54  ;;  %3979 = vmatprep.subr.bf16.mxu1 %v4255_v55  ;;  %v396_v54 = vld [vmem:[#allocation5 + $0x478] sm:$0xff]  ;;  %v4364_v55 = vcombine.low %v371_v17, %v379_v46  ;;  %v4381_v58 = vcombine.high %v387_v19, %v395_v52 }
 0x1f1   : > { %v4383_v59 = vcombine.high %v388_v53, %v396_v54  ;;  %v4382_v1 = vcombine.low %v388_v53, %v396_v54  ;;  %v515_v54 = vld [vmem:[#allocation5 + $0x830] sm:$0xff] }
 0x1f2   : > { %3797 = vmatmul.mubr.bf16.vlgmr.msra.gmra.mrb[8].mxu0 %v5389_v3  ;;  %3883 = vmatmul.mubr.bf16.vlgmr.msra.gmra.mrb[8].mxu1 %v5389_v3 }
 0x1f3   : > { %3894 = vmatpush1.bf16.msra.mxu0 %v4252_v61  ;;  %3980 = vmatpush1.bf16.msra.mxu1 %v4254_v62  ;;  %v411_v61 = vld [vmem:[#allocation5 + $0x4f0] sm:$0xff]  ;;  %v404_v62 = vld [vmem:[#allocation5 + $0x4b8] sm:$0xff] }
 0x1f4   : > { %3895 = vmatprep.subr.bf16.mxu0 %v4269_v63  ;;  %3981 = vmatprep.subr.bf16.mxu1 %v4271_v0  ;;  %v412_v63 = vld [vmem:[#allocation5 + $0x4f8] sm:$0xff]  ;;  %v4380_v0 = vcombine.low %v387_v19, %v395_v52  ;;  %v4397_v2 = vcombine.high %v403_v60, %v411_v61 }
 0x1f5   : > { %3925 = vmatprep.mubr.bf16.mxu0 %v5361_v43  ;;  %4011 = vmatprep.mubr.bf16.mxu1 %v5361_v43  ;;  %v4319_v43 = vcombine.high %v324_v23, %v332_v24  ;;  %v4399_v4 = vcombine.high %v404_v62, %v412_v63  ;;  %v4398_v11 = vcombine.low %v404_v62, %v412_v63  ;;  %v451_v24 = vld [vmem:[#allocation5 + $0x630] sm:$0xff] }
 0x1f6   : > { %v531_v63 = vld [vmem:[#allocation5 + $0x8b0] sm:$0xff] }
 0x1f7   : > { %3896 = vmatpush1.bf16.msra.mxu0 %v4268_v6  ;;  %3982 = vmatpush1.bf16.msra.mxu1 %v4270_v7  ;;  %v427_v6 = vld [vmem:[#allocation5 + $0x570] sm:$0xff]  ;;  %v420_v7 = vld [vmem:[#allocation5 + $0x538] sm:$0xff] }
 0x1f8   : > { %3897 = vmatprep.subr.bf16.mxu0 %v4285_v8  ;;  %3983 = vmatprep.subr.bf16.mxu1 %v4287_v9  ;;  %v428_v8 = vld [vmem:[#allocation5 + $0x578] sm:$0xff]  ;;  %v4396_v9 = vcombine.low %v403_v60, %v411_v61  ;;  %v4413_v12 = vcombine.high %v419_v5, %v427_v6 }
 0x1f9   : > { %v4415_v13 = vcombine.high %v420_v7, %v428_v8  ;;  %v4414_v21 = vcombine.low %v420_v7, %v428_v8  ;;  %v547_v8 = vld [vmem:[#allocation5 + $0x930] sm:$0xff] }
 0x1fb   : > { %3898 = vmatpush1.bf16.msra.mxu0 %v4284_v15  ;;  %3984 = vmatpush1.bf16.msra.mxu1 %v4286_v16  ;;  %v443_v15 = vld [vmem:[#allocation5 + $0x5f0] sm:$0xff]  ;;  %v436_v16 = vld [vmem:[#allocation5 + $0x5b8] sm:$0xff] }
 0x1fc   : > { %3899 = vmatprep.subr.bf16.mxu0 %v4301_v18  ;;  %3985 = vmatprep.subr.bf16.mxu1 %v4303_v20  ;;  %v444_v18 = vld [vmem:[#allocation5 + $0x5f8] sm:$0xff]  ;;  %v4412_v20 = vcombine.low %v419_v5, %v427_v6  ;;  %v4429_v22 = vcombine.high %v435_v14, %v443_v15 }
 0x1fd   : > { %v4431_v23 = vcombine.high %v436_v16, %v444_v18  ;;  %v4430_v28 = vcombine.low %v436_v16, %v444_v18  ;;  %v563_v18 = vld [vmem:[#allocation5 + $0x9b0] sm:$0xff] }
 0x1ff   : > { %3900 = vmatpush1.bf16.msra.mxu0 %v4300_v25  ;;  %3986 = vmatpush1.bf16.msra.mxu1 %v4302_v26  ;;  %v459_v25 = vld [vmem:[#allocation5 + $0x670] sm:$0xff]  ;;  %v452_v26 = vld [vmem:[#allocation5 + $0x638] sm:$0xff] }
 0x200   : > { %3901 = vmatprep.subr.bf16.mxu0 %v4317_v27  ;;  %3987 = vmatprep.subr.bf16.mxu1 %v4319_v43  ;;  %v460_v27 = vld [vmem:[#allocation5 + $0x678] sm:$0xff]  ;;  %v4428_v43 = vcombine.low %v435_v14, %v443_v15  ;;  %v4445_v29 = vcombine.high %v451_v24, %v459_v25 }
 0x201   : > { %v4447_v30 = vcombine.high %v452_v26, %v460_v27  ;;  %v4446_v36 = vcombine.low %v452_v26, %v460_v27  ;;  %v579_v26 = vld [vmem:[#allocation5 + $0xa30] sm:$0xff] }
 0x202   : > { %v587_v27 = vld [vmem:[#allocation5 + $0xa70] sm:$0xff] }
 0x203   : > { %3902 = vmatpush1.bf16.msra.mxu0 %v4316_v32  ;;  %3988 = vmatpush1.bf16.msra.mxu1 %v4318_v33  ;;  %v475_v32 = vld [vmem:[#allocation5 + $0x6f0] sm:$0xff]  ;;  %v468_v33 = vld [vmem:[#allocation5 + $0x6b8] sm:$0xff] }
 0x204   : > { %3903 = vmatprep.subr.bf16.mxu0 %v4333_v34  ;;  %3989 = vmatprep.subr.bf16.mxu1 %v4335_v35  ;;  %v476_v34 = vld [vmem:[#allocation5 + $0x6f8] sm:$0xff]  ;;  %v4444_v35 = vcombine.low %v451_v24, %v459_v25  ;;  %v4461_v38 = vcombine.high %v467_v31, %v475_v32 }
 0x205   : > { %v4463_v39 = vcombine.high %v468_v33, %v476_v34  ;;  %v4462_v17 = vcombine.low %v468_v33, %v476_v34  ;;  %v603_v33 = vld [vmem:[#allocation5 + $0xaf0] sm:$0xff]  ;;  %v596_v34 = vld [vmem:[#allocation5 + $0xab8] sm:$0xff] }
 0x207   : > { %3904 = vmatpush1.bf16.msra.mxu0 %v4332_v41  ;;  %3990 = vmatpush1.bf16.msra.mxu1 %v4334_v42  ;;  %v491_v41 = vld [vmem:[#allocation5 + $0x770] sm:$0xff]  ;;  %v484_v42 = vld [vmem:[#allocation5 + $0x738] sm:$0xff] }
 0x208   : > { %3905 = vmatprep.subr.bf16.mxu0 %v4349_v10  ;;  %3991 = vmatprep.subr.bf16.mxu1 %v4351_v44  ;;  %v492_v10 = vld [vmem:[#allocation5 + $0x778] sm:$0xff]  ;;  %v4460_v44 = vcombine.low %v467_v31, %v475_v32  ;;  %v4477_v46 = vcombine.high %v483_v40, %v491_v41  ;;  %v4573_v31 = vcombine.high %v579_v26, %v587_v27  ;;  %v595_v32 = vld [vmem:[#allocation5 + $0xab0] sm:$0xff] }
 0x209   : > { %v4479_v47 = vcombine.high %v484_v42, %v492_v10  ;;  %v4478_v19 = vcombine.low %v484_v42, %v492_v10  ;;  %v619_v42 = vld [vmem:[#allocation5 + $0xb70] sm:$0xff]  ;;  %v612_v10 = vld [vmem:[#allocation5 + $0xb38] sm:$0xff] }
 0x20b   : > { %3906 = vmatpush1.bf16.msra.mxu0 %v4348_v48  ;;  %3992 = vmatpush1.bf16.msra.mxu1 %v4350_v49  ;;  %v507_v48 = vld [vmem:[#allocation5 + $0x7f0] sm:$0xff]  ;;  %v500_v49 = vld [vmem:[#allocation5 + $0x7b8] sm:$0xff] }
 0x20c   : > { %3907 = vmatprep.subr.bf16.mxu0 %v4365_v50  ;;  %3993 = vmatprep.subr.bf16.mxu1 %v4367_v51  ;;  %v508_v50 = vld [vmem:[#allocation5 + $0x7f8] sm:$0xff]  ;;  %v4476_v51 = vcombine.low %v483_v40, %v491_v41  ;;  %v4493_v52 = vcombine.high %v499_v56, %v507_v48  ;;  %v611_v41 = vld [vmem:[#allocation5 + $0xb30] sm:$0xff] }
 0x20d   : > { %v4495_v53 = vcombine.high %v500_v49, %v508_v50  ;;  %v4494_v60 = vcombine.low %v500_v49, %v508_v50  ;;  %v785_v50 = vld [vmem:[#allocation7 + $0xa0] sm:$0xff] }
 0x20f   : > { %3908 = vmatpush1.bf16.msra.mxu0 %v4364_v55  ;;  %3994 = vmatpush1.bf16.msra.mxu1 %v4366_v57  ;;  %v523_v55 = vld [vmem:[#allocation5 + $0x870] sm:$0xff]  ;;  %v516_v57 = vld [vmem:[#allocation5 + $0x838] sm:$0xff] }
 0x210   : > { %3909 = vmatprep.subr.bf16.mxu0 %v4381_v58  ;;  %3995 = vmatprep.subr.bf16.mxu1 %v4383_v59  ;;  %v524_v58 = vld [vmem:[#allocation5 + $0x878] sm:$0xff]  ;;  %v4492_v59 = vcombine.low %v499_v56, %v507_v48  ;;  %v4509_v61 = vcombine.high %v515_v54, %v523_v55  ;;  %v770_v56 = vld [vmem:[#allocation7 + $0x28] sm:$0xff] }
 0x211   : > { %v4511_v62 = vcombine.high %v516_v57, %v524_v58  ;;  %v4510_v5 = vcombine.low %v516_v57, %v524_v58  ;;  %v772_v48 = vld [vmem:[#allocation7 + $0x38] sm:$0xff] }
 0x213   : > { %3910 = vmatpush1.bf16.msra.mxu0 %v4380_v0  ;;  %3996 = vmatpush1.bf16.msra.mxu1 %v4382_v1  ;;  %v539_v0 = vld [vmem:[#allocation5 + $0x8f0] sm:$0xff]  ;;  %v532_v1 = vld [vmem:[#allocation5 + $0x8b8] sm:$0xff] }
 0x214   : > { %3911 = vmatprep.subr.bf16.mxu0 %v4397_v2  ;;  %3997 = vmatprep.subr.bf16.mxu1 %v4399_v4  ;;  %v540_v2 = vld [vmem:[#allocation5 + $0x8f8] sm:$0xff]  ;;  %v4508_v4 = vcombine.low %v515_v54, %v523_v55  ;;  %v4525_v6 = vcombine.high %v531_v63, %v539_v0  ;;  %v627_v54 = vld [vmem:[#allocation5 + $0xbb0] sm:$0xff] }
 0x215   : > { %v4527_v7 = vcombine.high %v532_v1, %v540_v2  ;;  %v4526_v14 = vcombine.low %v532_v1, %v540_v2  ;;  %v635_v55 = vld [vmem:[#allocation5 + $0xbf0] sm:$0xff] }
 0x217   : > { %3912 = vmatpush1.bf16.msra.mxu0 %v4396_v9  ;;  %3998 = vmatpush1.bf16.msra.mxu1 %v4398_v11  ;;  %v555_v9 = vld [vmem:[#allocation5 + $0x970] sm:$0xff]  ;;  %v548_v11 = vld [vmem:[#allocation5 + $0x938] sm:$0xff] }
 0x218   : > { %3913 = vmatprep.subr.bf16.mxu0 %v4413_v12  ;;  %3999 = vmatprep.subr.bf16.mxu1 %v4415_v13  ;;  %v556_v12 = vld [vmem:[#allocation5 + $0x978] sm:$0xff]  ;;  %v4524_v13 = vcombine.low %v531_v63, %v539_v0  ;;  %v4541_v15 = vcombine.high %v547_v8, %v555_v9 }
 0x219   : > { %v4543_v16 = vcombine.high %v548_v11, %v556_v12 }
 0x21b   : > { %3914 = vmatpush1.bf16.msra.mxu0 %v4412_v20  ;;  %4000 = vmatpush1.bf16.msra.mxu1 %v4414_v21  ;;  %v571_v20 = vld [vmem:[#allocation5 + $0x9f0] sm:$0xff]  ;;  %v564_v21 = vld [vmem:[#allocation5 + $0x9b8] sm:$0xff] }
 0x21c   : > { %3915 = vmatprep.subr.bf16.mxu0 %v4429_v22  ;;  %4001 = vmatprep.subr.bf16.mxu1 %v4431_v23  ;;  %v572_v22 = vld [vmem:[#allocation5 + $0x9f8] sm:$0xff]  ;;  %v4540_v23 = vcombine.low %v547_v8, %v555_v9  ;;  %v4557_v24 = vcombine.high %v563_v18, %v571_v20 }
 0x21d   : > { %v4559_v25 = vcombine.high %v564_v21, %v572_v22 }
 0x21f   : > { %3916 = vmatpush1.bf16.msra.mxu0 %v4428_v43  ;;  %4002 = vmatpush1.bf16.msra.mxu1 %v4430_v28  ;;  %v580_v43 = vld [vmem:[#allocation5 + $0xa38] sm:$0xff] }
 0x220   : > { %3917 = vmatprep.subr.bf16.mxu0 %v4445_v29  ;;  %4003 = vmatprep.subr.bf16.mxu1 %v4447_v30  ;;  %v588_v28 = vld [vmem:[#allocation5 + $0xa78] sm:$0xff]  ;;  %v4556_v29 = vcombine.low %v563_v18, %v571_v20  ;;  %v4558_v30 = vcombine.low %v564_v21, %v572_v22  ;;  %v643_v18 = vld [vmem:[#allocation5 + $0xc30] sm:$0xff] }
 0x221   : > { %v651_v20 = vld [vmem:[#allocation5 + $0xc70] sm:$0xff]  ;;  %v644_v22 = vld [vmem:[#allocation5 + $0xc38] sm:$0xff] }
 0x223   : > { %3918 = vmatpush1.bf16.msra.mxu0 %v4444_v35  ;;  %4004 = vmatpush1.bf16.msra.mxu1 %v4446_v36  ;;  %v604_v35 = vld [vmem:[#allocation5 + $0xaf8] sm:$0xff]  ;;  %v4572_v36 = vcombine.low %v579_v26, %v587_v27  ;;  %v659_v27 = vld [vmem:[#allocation5 + $0xcb0] sm:$0xff] }
 0x224   : > { %3919 = vmatprep.subr.bf16.mxu0 %v4461_v38  ;;  %4005 = vmatprep.subr.bf16.mxu1 %v4463_v39  ;;  %v4574_v38 = vcombine.low %v580_v43, %v588_v28  ;;  %v4589_v39 = vcombine.high %v595_v32, %v603_v33  ;;  %v4591_v40 = vcombine.high %v596_v34, %v604_v35 }
 0x225   : > { %v4590_v49 = vcombine.low %v596_v34, %v604_v35  ;;  %v683_v34 = vld [vmem:[#allocation5 + $0xd70] sm:$0xff]  ;;  %v676_v35 = vld [vmem:[#allocation5 + $0xd38] sm:$0xff] }
 0x227   : > { %3920 = vmatpush1.bf16.msra.mxu0 %v4460_v44  ;;  %4006 = vmatpush1.bf16.msra.mxu1 %v4462_v17  ;;  %v620_v44 = vld [vmem:[#allocation5 + $0xb78] sm:$0xff]  ;;  %v769_v17 = vld [vmem:[#allocation7 + $0x20] sm:$0xff] }
 0x228   : > { %3921 = vmatprep.subr.bf16.mxu0 %v4477_v46  ;;  %4007 = vmatprep.subr.bf16.mxu1 %v4479_v47  ;;  %v771_v46 = vld [vmem:[#allocation7 + $0x30] sm:$0xff]  ;;  %v4588_v47 = vcombine.low %v595_v32, %v603_v33 }
 0x229   : > { %v675_v33 = vld [vmem:[#allocation5 + $0xd30] sm:$0xff] }
 0x22b   : > { %3922 = vmatpush1.bf16.msra.mxu0 %v4476_v51  ;;  %4008 = vmatpush1.bf16.msra.mxu1 %v4478_v19  ;;  %v4605_v51 = vcombine.high %v611_v41, %v619_v42 }
 0x22c   : > { %3923 = vmatprep.subr.bf16.mxu0 %v4493_v52  ;;  %4009 = vmatprep.subr.bf16.mxu1 %v4495_v53  ;;  %v787_v52 = vld [vmem:[#allocation7 + $0xb0] sm:$0xff]  ;;  %v4607_v53 = vcombine.high %v612_v10, %v620_v44 }
 0x22f   : > { %3924 = vmatpush1.bf16.msra.mxu0 %v4492_v59  ;;  %4010 = vmatpush1.bf16.msra.mxu1 %v4494_v60  ;;  %v786_v60 = vld [vmem:[#allocation7 + $0xa8] sm:$0xff] }
 0x230   : > { %3936 = vmatprep.subr.bf16.mxu0 %v4509_v61  ;;  %4022 = vmatprep.subr.bf16.mxu1 %v4511_v62  ;;  %v628_v61 = vld [vmem:[#allocation5 + $0xbb8] sm:$0xff] }
 0x231   : > { %v636_v62 = vld [vmem:[#allocation5 + $0xbf8] sm:$0xff] }
 0x232   : > { %3926 = vmatmul.mubr.bf16.vlgmr.msra.gmra.mrb[12].mxu0 %v5366_v37  ;;  %4012 = vmatmul.mubr.bf16.vlgmr.msra.gmra.mrb[12].mxu1 %v5366_v37  ;;  %v4542_v37 = vcombine.low %v548_v11, %v556_v12  ;;  %v4621_v12 = vcombine.high %v627_v54, %v635_v55 }
 0x233   : > { %3937 = vmatpush1.bf16.msra.mxu0 %v4508_v4  ;;  %4023 = vmatpush1.bf16.msra.mxu1 %v4510_v5  ;;  %v788_v4 = vld [vmem:[#allocation7 + $0xb8] sm:$0xff]  ;;  %v4604_v5 = vcombine.low %v611_v41, %v619_v42  ;;  %v691_v42 = vld [vmem:[#allocation5 + $0xdb0] sm:$0xff] }
 0x234   : > { %3938 = vmatprep.subr.bf16.mxu0 %v4525_v6  ;;  %4024 = vmatprep.subr.bf16.mxu1 %v4527_v7  ;;  %v4606_v6 = vcombine.low %v612_v10, %v620_v44  ;;  %v699_v10 = vld [vmem:[#allocation5 + $0xdf0] sm:$0xff]  ;;  %v692_v44 = vld [vmem:[#allocation5 + $0xdb8] sm:$0xff] }
 0x235   : > { %3968 = vmatprep.mubr.bf16.mxu0 %v5371_v45  ;;  %4054 = vmatprep.mubr.bf16.mxu1 %v5371_v45  ;;  %v4575_v45 = vcombine.high %v580_v43, %v588_v28  ;;  %v667_v43 = vld [vmem:[#allocation5 + $0xcf0] sm:$0xff]  ;;  %v660_v28 = vld [vmem:[#allocation5 + $0xcb8] sm:$0xff] }
 0x237   : > { %3939 = vmatpush1.bf16.msra.mxu0 %v4524_v13  ;;  %4025 = vmatpush1.bf16.msra.mxu1 %v4526_v14 }
 0x238   : > { %3940 = vmatprep.subr.bf16.mxu0 %v4541_v15  ;;  %4026 = vmatprep.subr.bf16.mxu1 %v4543_v16  ;;  %v4623_v16 = vcombine.high %v628_v61, %v636_v62 }
 0x23b   : > { %3941 = vmatpush1.bf16.msra.mxu0 %v4540_v23  ;;  %4027 = vmatpush1.bf16.msra.mxu1 %v4542_v37  ;;  %v652_v23 = vld [vmem:[#allocation5 + $0xc78] sm:$0xff]  ;;  %v4620_v37 = vcombine.low %v627_v54, %v635_v55 }
 0x23c   : > { %3942 = vmatprep.subr.bf16.mxu0 %v4557_v24  ;;  %4028 = vmatprep.subr.bf16.mxu1 %v4559_v25  ;;  %v4622_v24 = vcombine.low %v628_v61, %v636_v62  ;;  %v4637_v25 = vcombine.high %v643_v18, %v651_v20  ;;  %v4639_v26 = vcombine.high %v644_v22, %v652_v23 }
 0x23f   : > { %3943 = vmatpush1.bf16.msra.mxu0 %v4556_v29  ;;  %4029 = vmatpush1.bf16.msra.mxu1 %v4558_v30  ;;  %v668_v29 = vld [vmem:[#allocation5 + $0xcf8] sm:$0xff]  ;;  %v4636_v30 = vcombine.low %v643_v18, %v651_v20 }
 0x240   : > { %3944 = vmatprep.subr.bf16.mxu0 %v4573_v31  ;;  %4030 = vmatprep.subr.bf16.mxu1 %v4575_v45  ;;  %v4638_v31 = vcombine.low %v644_v22, %v652_v23  ;;  %v4653_v45 = vcombine.high %v659_v27, %v667_v43  ;;  %v4655_v32 = vcombine.high %v660_v28, %v668_v29  ;;  %v773_v23 = vld [vmem:[#allocation7 + $0x40] sm:$0xff] }
 0x243   : > { %3945 = vmatpush1.bf16.msra.mxu0 %v4572_v36  ;;  %4031 = vmatpush1.bf16.msra.mxu1 %v4574_v38  ;;  %v684_v36 = vld [vmem:[#allocation5 + $0xd78] sm:$0xff]  ;;  %v4652_v38 = vcombine.low %v659_v27, %v667_v43  ;;  %v789_v27 = vld [vmem:[#allocation7 + $0xc0] sm:$0xff] }
 0x244   : > { %3946 = vmatprep.subr.bf16.mxu0 %v4589_v39  ;;  %4032 = vmatprep.subr.bf16.mxu1 %v4591_v40  ;;  %v4654_v39 = vcombine.low %v660_v28, %v668_v29  ;;  %v4669_v40 = vcombine.high %v675_v33, %v683_v34  ;;  %v4671_v41 = vcombine.high %v676_v35, %v684_v36 }
 0x245   : > { %v3626_v19 = vpop.f32.mrb[4].mxu0  ;;  %v3712_v58 = vpop.f32.mrb[4].mxu1 }
 0x246   : > { %v4767_v57 = vadd.f32 %v3626_v19, %v769_v17  ;;  %v3628_v59 = vpop.f32.mrb[5].mxu0  ;;  %v4771_v63 = vadd.f32 %v3712_v58, %v771_v46  ;;  %v3714_v1 = vpop.f32.mrb[5].mxu1  ;;  %v700_v17 = vld [vmem:[#allocation5 + $0xdf8] sm:$0xff]  ;;  %v4668_v46 = vcombine.low %v675_v33, %v683_v34  ;;  %v731_v58 = vld [vmem:[#allocation5 + $0xef0] sm:$0xff] }
 0x247   : > { %v4768_v0 = vadd.f32 %v3628_v59, %v770_v56  ;;  %v3630_v2 = vpop.f32.mrb[6].mxu0  ;;  %3947 = vmatpush1.bf16.msra.mxu0 %v4588_v47  ;;  %v4772_v7 = vadd.f32 %v3714_v1, %v772_v48  ;;  %v3716_v9 = vpop.f32.mrb[6].mxu1  ;;  %4033 = vmatpush1.bf16.msra.mxu1 %v4590_v49  ;;  %v4670_v47 = vcombine.low %v676_v35, %v684_v36  ;;  %v707_v49 = vld [vmem:[#allocation5 + $0xe30] sm:$0xff]  ;;  %v716_v19 = vld [vmem:[#allocation5 + $0xe78] sm:$0xff] }
 0x248   : > { %4069 = vst [vmem:[%s5378_s22 + $0x20] sm:$0xff] %v4767_v57  ;;  %v4769_v8 = vadd.f32 %v3630_v2, %v785_v50  ;;  %v3632_v11 = vpop.f32.mrb[7].mxu0  ;;  %3948 = vmatprep.subr.bf16.mxu0 %v4605_v51  ;;  %4071 = vst [vmem:[%s5378_s22 + $0x30] sm:$0xff] %v4771_v63  ;;  %v4773_v13 = vadd.f32 %v3716_v9, %v787_v52  ;;  %v3718_v15 = vpop.f32.mrb[7].mxu1  ;;  %4034 = vmatprep.subr.bf16.mxu1 %v4607_v53  ;;  %v715_v50 = vld [vmem:[#allocation5 + $0xe70] sm:$0xff]  ;;  %v708_v51 = vld [vmem:[#allocation5 + $0xe38] sm:$0xff] }
 0x249   : > { %4070 = vst [vmem:[%s5378_s22 + $0x28] sm:$0xff] %v4768_v0  ;;  %v4770_v14 = vadd.f32 %v3632_v11, %v786_v60  ;;  %4072 = vst [vmem:[%s5378_s22 + $0x38] sm:$0xff] %v4772_v7  ;;  %v4774_v21 = vadd.f32 %v3718_v15, %v788_v4  ;;  %v4685_v56 = vcombine.high %v691_v42, %v699_v10  ;;  %v723_v57 = vld [vmem:[#allocation5 + $0xeb0] sm:$0xff]  ;;  %v724_v59 = vld [vmem:[#allocation5 + $0xeb8] sm:$0xff] }
 0x24a   : > { %4085 = vst [vmem:[%s5378_s22 + $0xa0] sm:$0xff] %v4769_v8  ;;  %4087 = vst [vmem:[%s5378_s22 + $0xb0] sm:$0xff] %v4773_v13  ;;  %v4687_v48 = vcombine.high %v692_v44, %v700_v17  ;;  %v4684_v52 = vcombine.low %v691_v42, %v699_v10  ;;  %v4686_v53 = vcombine.low %v692_v44, %v700_v17  ;;  %v732_v60 = vld [vmem:[#allocation5 + $0xef8] sm:$0xff]  ;;  %v739_v1 = vld [vmem:[#allocation5 + $0xf30] sm:$0xff] }
 0x24b   : > { %4086 = vst [vmem:[%s5378_s22 + $0xa8] sm:$0xff] %v4770_v14  ;;  %3949 = vmatpush1.bf16.msra.mxu0 %v4604_v5  ;;  %4088 = vst [vmem:[%s5378_s22 + $0xb8] sm:$0xff] %v4774_v21  ;;  %4035 = vmatpush1.bf16.msra.mxu1 %v4606_v6  ;;  %v4701_v54 = vcombine.high %v707_v49, %v715_v50  ;;  %v4703_v55 = vcombine.high %v708_v51, %v716_v19  ;;  %v747_v2 = vld [vmem:[#allocation5 + $0xf70] sm:$0xff]  ;;  %v740_v4 = vld [vmem:[#allocation5 + $0xf38] sm:$0xff] }
 0x24c   : > { %3950 = vmatprep.subr.bf16.mxu0 %v4621_v12  ;;  %4036 = vmatprep.subr.bf16.mxu1 %v4623_v16  ;;  %v4700_v61 = vcombine.low %v707_v49, %v715_v50  ;;  %v4702_v62 = vcombine.low %v708_v51, %v716_v19  ;;  %v4717_v63 = vcombine.high %v723_v57, %v731_v58  ;;  %v748_v5 = vld [vmem:[#allocation5 + $0xf78] sm:$0xff]  ;;  %v755_v11 = vld [vmem:[#allocation5 + $0xfb0] sm:$0xff]  ;;  %v777_v44 = vld [vmem:[#allocation7 + $0x60] sm:$0xff] }
 0x24d   : > { %v4719_v0 = vcombine.high %v724_v59, %v732_v60  ;;  %v4716_v6 = vcombine.low %v723_v57, %v731_v58  ;;  %v4718_v7 = vcombine.low %v724_v59, %v732_v60  ;;  %v4733_v8 = vcombine.high %v739_v1, %v747_v2  ;;  %v763_v12 = vld [vmem:[#allocation5 + $0xff0] sm:$0xff]  ;;  %v756_v13 = vld [vmem:[#allocation5 + $0xfb8] sm:$0xff] }
 0x24e   : > { %v4735_v9 = vcombine.high %v740_v4, %v748_v5  ;;  %v764_v14 = vld [vmem:[#allocation5 + $0xff8] sm:$0xff]  ;;  %v4732_v15 = vcombine.low %v739_v1, %v747_v2  ;;  %v4734_v16 = vcombine.low %v740_v4, %v748_v5  ;;  %v4749_v18 = vcombine.high %v755_v11, %v763_v12  ;;  %v779_v17 = vld [vmem:[#allocation7 + $0x70] sm:$0xff] }
 0x24f   : > { %3951 = vmatpush1.bf16.msra.mxu0 %v4620_v37  ;;  %4037 = vmatpush1.bf16.msra.mxu1 %v4622_v24  ;;  %v4751_v20 = vcombine.high %v756_v13, %v764_v14  ;;  %v4748_v21 = vcombine.low %v755_v11, %v763_v12  ;;  %v4750_v22 = vcombine.low %v756_v13, %v764_v14  ;;  %v775_v37 = vld [vmem:[#allocation7 + $0x50] sm:$0xff]  ;;  %v774_v24 = vld [vmem:[#allocation7 + $0x48] sm:$0xff]  ;;  %v792_v34 = vld [vmem:[#allocation7 + $0xd8] sm:$0xff] }
 0x250   : > { %3952 = vmatprep.subr.bf16.mxu0 %v4637_v25  ;;  %4038 = vmatprep.subr.bf16.mxu1 %v4639_v26  ;;  %v776_v26 = vld [vmem:[#allocation7 + $0x58] sm:$0xff]  ;;  %v795_v19 = vld [vmem:[#allocation7 + $0xf0] sm:$0xff] }
 0x251   : > { %v796_v58 = vld [vmem:[#allocation7 + $0xf8] sm:$0xff] }
 0x253   : > { %3953 = vmatpush1.bf16.msra.mxu0 %v4636_v30  ;;  %4039 = vmatpush1.bf16.msra.mxu1 %v4638_v31  ;;  %v791_v30 = vld [vmem:[#allocation7 + $0xd0] sm:$0xff]  ;;  %v790_v31 = vld [vmem:[#allocation7 + $0xc8] sm:$0xff] }
 0x254   : > { %3954 = vmatprep.subr.bf16.mxu0 %v4653_v45  ;;  %4040 = vmatprep.subr.bf16.mxu1 %v4655_v32 }
 0x257   : > { %3955 = vmatpush1.bf16.msra.mxu0 %v4652_v38  ;;  %4041 = vmatpush1.bf16.msra.mxu1 %v4654_v39 }
 0x258   : > { %3956 = vmatprep.subr.bf16.mxu0 %v4669_v40  ;;  %4042 = vmatprep.subr.bf16.mxu1 %v4671_v41 }
 0x25b   : > { %3957 = vmatpush1.bf16.msra.mxu0 %v4668_v46  ;;  %4043 = vmatpush1.bf16.msra.mxu1 %v4670_v47  ;;  %v778_v46 = vld [vmem:[#allocation7 + $0x68] sm:$0xff] }
 0x25c   : > { %3958 = vmatprep.subr.bf16.mxu0 %v4685_v56  ;;  %4044 = vmatprep.subr.bf16.mxu1 %v4687_v48  ;;  %v780_v56 = vld [vmem:[#allocation7 + $0x78] sm:$0xff]  ;;  %v793_v48 = vld [vmem:[#allocation7 + $0xe0] sm:$0xff] }
 0x25f   : > { %3959 = vmatpush1.bf16.msra.mxu0 %v4684_v52  ;;  %4045 = vmatpush1.bf16.msra.mxu1 %v4686_v53  ;;  %v794_v52 = vld [vmem:[#allocation7 + $0xe8] sm:$0xff] }
 0x260   : > { %3960 = vmatprep.subr.bf16.mxu0 %v4701_v54  ;;  %4046 = vmatprep.subr.bf16.mxu1 %v4703_v55 }
 0x263   : > { %3961 = vmatpush1.bf16.msra.mxu0 %v4700_v61  ;;  %4047 = vmatpush1.bf16.msra.mxu1 %v4702_v62 }
 0x264   : > { %3962 = vmatprep.subr.bf16.mxu0 %v4717_v63  ;;  %4048 = vmatprep.subr.bf16.mxu1 %v4719_v0 }
 0x267   : > { %3963 = vmatpush1.bf16.msra.mxu0 %v4716_v6  ;;  %4049 = vmatpush1.bf16.msra.mxu1 %v4718_v7 }
 0x268   : > { %3964 = vmatprep.subr.bf16.mxu0 %v4733_v8  ;;  %4050 = vmatprep.subr.bf16.mxu1 %v4735_v9 }
 0x26b   : > { %3965 = vmatpush1.bf16.msra.mxu0 %v4732_v15  ;;  %4051 = vmatpush1.bf16.msra.mxu1 %v4734_v16 }
 0x26c   : > { %3966 = vmatprep.subr.bf16.mxu0 %v4749_v18  ;;  %4052 = vmatprep.subr.bf16.mxu1 %v4751_v20 }
 0x26f   : > { %3967 = vmatpush1.bf16.msra.mxu0 %v4748_v21  ;;  %4053 = vmatpush1.bf16.msra.mxu1 %v4750_v22 }
 0x272   : > { %3969 = vmatmul.mubr.bf16.vlgmr.msra.gmra.mrb[12].mxu0 %v5389_v3  ;;  %4055 = vmatmul.mubr.bf16.vlgmr.msra.gmra.mrb[12].mxu1 %v5389_v3 }
 0x2c5   : > { %v3798_v25 = vpop.f32.mrb[8].mxu0  ;;  %v3884_v28 = vpop.f32.mrb[8].mxu1 }
 0x2c6   : > { %v4775_v43 = vadd.f32 %v3798_v25, %v773_v23  ;;  %v3800_v29 = vpop.f32.mrb[9].mxu0  ;;  %v4779_v45 = vadd.f32 %v3884_v28, %v775_v37  ;;  %v3886_v33 = vpop.f32.mrb[9].mxu1 }
 0x2c7   : > { %v4776_v32 = vadd.f32 %v3800_v29, %v774_v24  ;;  %v3802_v3 = vpop.f32.mrb[10].mxu0  ;;  %v4780_v35 = vadd.f32 %v3886_v33, %v776_v26  ;;  %v3888_v38 = vpop.f32.mrb[10].mxu1 }
 0x2c8   : > { %4073 = vst [vmem:[%s5378_s22 + $0x40] sm:$0xff] %v4775_v43  ;;  %v4777_v36 = vadd.f32 %v3802_v3, %v789_v27  ;;  %v3804_v39 = vpop.f32.mrb[11].mxu0  ;;  %4075 = vst [vmem:[%s5378_s22 + $0x50] sm:$0xff] %v4779_v45  ;;  %v4781_v40 = vadd.f32 %v3888_v38, %v791_v30  ;;  %v3890_v42 = vpop.f32.mrb[11].mxu1 }
 0x2c9   : > { %4074 = vst [vmem:[%s5378_s22 + $0x48] sm:$0xff] %v4776_v32  ;;  %v4778_v41 = vadd.f32 %v3804_v39, %v790_v31  ;;  %4076 = vst [vmem:[%s5378_s22 + $0x58] sm:$0xff] %v4780_v35  ;;  %v4782_v10 = vadd.f32 %v3890_v42, %v792_v34 }
 0x2ca   : > { %4089 = vst [vmem:[%s5378_s22 + $0xc0] sm:$0xff] %v4777_v36  ;;  %4091 = vst [vmem:[%s5378_s22 + $0xd0] sm:$0xff] %v4781_v40 }
 0x2cb   : > { %4090 = vst [vmem:[%s5378_s22 + $0xc8] sm:$0xff] %v4778_v41  ;;  %4092 = vst [vmem:[%s5378_s22 + $0xd8] sm:$0xff] %v4782_v10 }
 0x345   : > { %v3970_v47 = vpop.f32.mrb[12].mxu0  ;;  %v4056_v50 = vpop.f32.mrb[12].mxu1 }
 0x346   : > { %v4783_v49 = vadd.f32 %v3970_v47, %v777_v44  ;;  %v3972_v51 = vpop.f32.mrb[13].mxu0  ;;  %v4787_v53 = vadd.f32 %v4056_v50, %v779_v17  ;;  %v4058_v55 = vpop.f32.mrb[13].mxu1 }
 0x347   : > { %v4784_v54 = vadd.f32 %v3972_v51, %v778_v46  ;;  %v3974_v57 = vpop.f32.mrb[14].mxu0  ;;  %v4788_v59 = vadd.f32 %v4058_v55, %v780_v56  ;;  %v4060_v61 = vpop.f32.mrb[14].mxu1 }
 0x348   : > { %4077 = vst [vmem:[%s5378_s22 + $0x60] sm:$0xff] %v4783_v49  ;;  %v4785_v60 = vadd.f32 %v3974_v57, %v793_v48  ;;  %v3976_v62 = vpop.f32.mrb[15].mxu0  ;;  %4079 = vst [vmem:[%s5378_s22 + $0x70] sm:$0xff] %v4787_v53  ;;  %v4789_v63 = vadd.f32 %v4060_v61, %v795_v19  ;;  %v4062_v1 = vpop.f32.mrb[15].mxu1 }
 0x349   : > { %4078 = vst [vmem:[%s5378_s22 + $0x68] sm:$0xff] %v4784_v54  ;;  %v4786_v0 = vadd.f32 %v3976_v62, %v794_v52  ;;  %4080 = vst [vmem:[%s5378_s22 + $0x78] sm:$0xff] %v4788_v59  ;;  %v4790_v2 = vadd.f32 %v4062_v1, %v796_v58 }
 0x34a   : > { %4093 = vst [vmem:[%s5378_s22 + $0xe0] sm:$0xff] %v4785_v60  ;;  %4095 = vst [vmem:[%s5378_s22 + $0xf0] sm:$0xff] %v4789_v63 }
 0x34b   : > { %4094 = vst [vmem:[%s5378_s22 + $0xe8] sm:$0xff] %v4786_v0  ;;  %4096 = vst [vmem:[%s5378_s22 + $0xf8] sm:$0xff] %v4790_v2 }
 0x34c   : > { %5023 = shalt.err (!%p5020_p11)
}
 0x34d   : > { %s5024_s11 = scalar_lea.hbm %s5425_s9, 4096  ;;  %s5028_s29 = scalar_lea.hbm %s5484_s3, 8192 }
 0x34e   : > { %p5025_p0 = scmp.ne.s32.totalorder %s5425_s9, %s5024_s11  ;;  %p5029_p6 = scmp.lt.u32.totalorder %s5425_s9, %s5484_s3 }
 0x34f   : > { %p5030_p7 = scmp.lt.u32.totalorder %s5028_s29, %s5024_s11  ;;  %p5032_p8 = scmp.lt.u32.totalorder %s5024_s11, %s5425_s9 }
 0x350   : > { %p5026_p4 = pnand %p5025_p0, %p5499_p12 }
 0x351   : > { %p5031_p2 = por %p5030_p7, %p5029_p6 }
 0x352   : > { %p5027_p13 = pneg %p5026_p4 }
 0x353   : > { %p5033_p1 = por %p5032_p8, %p5031_p2 }
 0x355   : > { %p5034_p10 = pnand %p5033_p1, %p5027_p13 }
 0x357   : > { %5037 = shalt.err (!%p5034_p10)
}
 0x358   : > { %s5108_s22 = smov 2048   ;;  %s5109_s24 = smov 128  }
 0x359   : > { %4833 = dma.vmem_to_hbm [thread:$0]  (%p5499_p12), %s5427_s8, 4096, %s5425_s9, %s4098_s10, %s5108_s22, %s5108_s22, %s5109_s24  }
 0x35a PF: > { %s4129_s15 = sand.u32 1, %s5076_s12   ;;  %p5500_p3 = scmp.ne.s32.totalorder %s5492_s23, 0 }
 0x35b   : > { %p5501_p5 = scmp.ge.s32.totalorder %s5096_s17, 2  ;;  %s4130_s26 = scalar_lea.sflag [#allocation4], %s4129_s15 }
 0x35d   : > { %p4847_p9 = pnand %p5501_p5, %p5500_p3 }
 0x35f   : > { %5071 = dma.done.wait (!%p4847_p9), %s4130_s26, 4096  }
 0x360   : > { %5073 = vsyncadd (!%p4847_p9), %s4130_s26, 4294963200  ;;  %s20_s17 = sadd.s32 1, %s5096_s17   ;;  %s5502_s12 = smov %s5080_s13 }
 0x361   : > { %p17_p11 = scmp.ge.s32.totalorder %s20_s17, 4   ;;  %s5503_s13 = smov %s5084_s14 }
 0x362   : > { %s5504_s14 = smov %s5272_s5  ;;  %s5505_s15 = smov %s5092_s16 }
 0x363   : > { %s5506_s16 = smov %s5508_s19  ;;  %19 = sbr.rel (!%p17_p11) target bundleno = 7 (0x7), region = 86 }
 0x36a   :  { %4135 = vsyncpa [#allocation3], 1 }
 0x36b   :  { %4137 = vsyncpa [#allocation3 + $0x1], 1 }
 0x36c   :  { %4138 = vsyncpa [#allocation6], 1 }
 0x36d   :  { %4139 = vsyncpa [#allocation4], 1 }
 0x36e   :  { %4141 = vsyncpa [#allocation4 + $0x1], 1 }

</bundles_post_ra>
